<compile_context>
chip_gen: v6e
topology: v6e:2x2x1
jax: 0.10.0
libtpu: 0.0.40
codegen_flags: <defaults>
</compile_context>

<pallas_src>
import functools

import jax
import jax.numpy as jnp
from jax.experimental import pallas as pl
from jax.experimental.pallas import tpu as pltpu


def _round_up(x, m):
    return ((x + m - 1) // m) * m


def _tpu_defaults():
    """Best-effort hardware query: (physical VMEM bytes, # TensorCores/chip)."""
    vmem_bytes = 128 * 1024 * 1024
    num_tc = 1
    try:
        vmem_bytes = int(pltpu.get_tpu_info().vmem_capacity_bytes)
    except Exception:
        pass
    try:
        kind = jax.devices()[0].device_kind.lower()
        if "v7" in kind or "7x" in kind:
            num_tc = 2
    except Exception:
        pass
    return vmem_bytes, num_tc


# ----------------------------- Pallas kernel -------------------------------
def _ffn_fused_kernel(*refs, n_layers):
    """Fully fused MLP on one (tm, K) row tile.

    refs = (x_ref, w0, b0, w1, b1, ..., w_{L-1}, b_{L-1}, alpha_ref, o_ref).
    Weights/biases have constant index maps (single-buffered, VMEM resident
    across all grid steps); intermediate activations never touch HBM.
    """
    x_ref = refs[0]
    wb_refs = refs[1:1 + 2 * n_layers]
    alpha_ref = refs[1 + 2 * n_layers]
    o_ref = refs[2 + 2 * n_layers]

    alpha = alpha_ref[0]          # shared PReLU parameter (SMEM scalar)
    h = x_ref[...]
    for i in range(n_layers):
        w_ref = wb_refs[2 * i]
        b = wb_refs[2 * i + 1][...]          # (1, N) f32 bias, broadcast once
        # Weights were cast in the wrapper; only the small (tm, K_i) activation
        # tile is cast here (no-op in the f32 path). Accumulate in f32 on MXU.
        y = jnp.dot(h.astype(w_ref.dtype), w_ref[...],
                    preferred_element_type=jnp.float32) + b
        if i < n_layers - 1:
            # PReLU epilogue in f32; dropout is identity in eval mode.
            y = jnp.where(y >= 0.0, y, alpha * y)
        h = y
    o_ref[...] = h.astype(o_ref.dtype)


# ------------------------------ forward pass --------------------------------
def feedforwardnet_forward(x, params, *, tm=None, compute_dtype=None):
    """Fused FeedForwardNet forward:  x -> [Linear -> PReLU]* -> Linear."""
    weights = list(params["weights"])
    biases = list(params["biases"])
    alpha = jnp.asarray(params["alpha"], jnp.float32)
    n_layers = len(weights)

    M, K = x.shape
    out_feats = weights[-1].shape[1]
    vmem_bytes, num_tc = _tpu_defaults()

    # --- pad every feature dim to a lane multiple (128) with zeros ---------
    # Exact: padded input cols multiply zero weight rows; padded hidden cols
    # get bias 0 -> PReLU(0)=0 -> zero rows in the next layer's weight.
    # (We do NOT force 128 -> 256 on v6e/v7x: that would double FLOPs with
    #  zeros; choose 256-wide hiddens at model-config time instead.)
    dims = [K] + [w.shape[1] for w in weights]
    pdims = [_round_up(max(d, 128), 128) for d in dims]
    if pdims[0] != K:
        x = jnp.pad(x, ((0, 0), (0, pdims[0] - K)))
    for i, w in enumerate(weights):
        pin, pout = pdims[i], pdims[i + 1]
        if (pin, pout) != w.shape:
            weights[i] = jnp.pad(w, ((0, pin - w.shape[0]),
                                     (0, pout - w.shape[1])))
        if pout != biases[i].shape[0]:
            biases[i] = jnp.pad(biases[i], ((0, pout - biases[i].shape[0]),))
    k_pad, n_pad = pdims[0], pdims[-1]

    # --- operand dtypes: cast ONCE here, never per grid step ---------------
    w_dtype = jnp.dtype(compute_dtype) if compute_dtype is not None else jnp.dtype(jnp.float32)
    weights = [w.astype(w_dtype) for w in weights]
    if compute_dtype is not None:
        x = x.astype(w_dtype)                  # halves streamed-x HBM bytes
    biases2d = [b.reshape(1, -1).astype(jnp.float32) for b in biases]

    weight_bytes = sum(int(w.size) * w.dtype.itemsize for w in weights)
    bias_bytes = sum(int(b.size) * b.dtype.itemsize for b in biases2d)

    # --- generation-aware row tile ------------------------------------------
    if tm is None:
        tm = 1024 if vmem_bytes >= 100 * 1024 * 1024 else 512
    # Don't let one tile swallow all of M when 2 TensorCores exist (v7x).
    tm = max(8, min(tm, _round_up(pl.cdiv(M, num_tc), 8)))

    def _footprint(tm_, wb=1):
        io = 2 * 4 * tm_ * (k_pad + n_pad)      # double-buffered x / out tiles
        act = 2 * 4 * tm_ * max(pdims)          # activation headroom
        return wb * (weight_bytes + bias_bytes) + io + act

    budget = int(0.7 * vmem_bytes)
    while tm > 8 and _footprint(tm) > budget:
        tm = max(8, _round_up(tm // 2, 8))
    if _footprint(tm) > budget:
        # TODO(synk): N/K-tiled fallback for weight sets exceeding VMEM (v7x).
        raise ValueError("FeedForwardNet weights do not fit VMEM; use bf16 "
                         "weights or a tiled-weight kernel.")

    m_pad = _round_up(M, tm)
    if m_pad != M:
        x = jnp.pad(x, ((0, m_pad - M), (0, 0)))
    grid_m = m_pad // tm

    # vmem limit: cover worst case (weights double-buffered on fallback) with
    # headroom, never below 32 MiB, never above ~90% of physical.
    vmem_limit = int(min(max(2 * _footprint(tm, wb=2), 32 * 1024 * 1024),
                         int(0.9 * vmem_bytes)))

    flops = 2 * m_pad * sum(pdims[i] * pdims[i + 1] for i in range(n_layers))
    bytes_accessed = (int(x.size) * x.dtype.itemsize + weight_bytes
                      + bias_bytes + m_pad * n_pad * 4)
    cost = pl.CostEstimate(flops=flops, transcendentals=0,
                           bytes_accessed=bytes_accessed)

    operands = [x]
    for w, b in zip(weights, biases2d):
        operands.extend([w, b])
    operands.append(alpha)

    kernel = functools.partial(_ffn_fused_kernel, n_layers=n_layers)

    def _call(single_buffer_weights):
        kw = ({"pipeline_mode": pl.Buffered(1)}
              if single_buffer_weights else {})
        in_specs = [pl.BlockSpec((tm, k_pad), lambda i: (i, 0))]   # streamed x
        for w, b in zip(weights, biases2d):
            in_specs.append(pl.BlockSpec(w.shape, lambda i: (0, 0), **kw))
            in_specs.append(pl.BlockSpec(b.shape, lambda i: (0, 0), **kw))
        in_specs.append(pl.BlockSpec(memory_space=pltpu.MemorySpace.SMEM))
        return pl.pallas_call(
            kernel,
            out_shape=jax.ShapeDtypeStruct((m_pad, n_pad), jnp.float32),
            grid_spec=pltpu.PrefetchScalarGridSpec(
                num_scalar_prefetch=0,
                grid=(grid_m,),
                in_specs=in_specs,
                out_specs=pl.BlockSpec((tm, n_pad), lambda i: (i, 0)),
            ),
            compiler_params=pltpu.CompilerParams(
                dimension_semantics=("parallel",),
                vmem_limit_bytes=vmem_limit,
            ),
            cost_estimate=cost,
        )(*operands)

    try:
        out = _call(True)
    except Exception:
        # Buffered(1) not accepted by this jax version -> default buffering.
        out = _call(False)

    return out[:M, :out_feats]


# ------------------------- parameter construction --------------------------
def init_feedforwardnet_params(key, in_feats, hidden, out_feats, n_layers):
    """Matches FeedForwardNet.reset_parameters(): xavier_uniform_(W,
    gain=calculate_gain('relu')=sqrt(2)), zero bias, PReLU alpha=0.25."""
    gain = jnp.sqrt(2.0)
    if n_layers == 1:
        dims = [(in_feats, out_feats)]
    else:
        dims = [(in_feats, hidden)]
        dims += [(hidden, hidden)] * (n_layers - 2)
        dims += [(hidden, out_feats)]

    weights, biases = [], []
    for (fin, fout) in dims:
        key, sub = jax.random.split(key)
        bound = gain * jnp.sqrt(6.0 / (fin + fout))
        # Stored as [in, out]; xavier bound is symmetric in fan_in/fan_out so
        # the distribution matches torch's [out, in] layout.
        w = jax.random.uniform(sub, (fin, fout), jnp.float32, -bound, bound)
        weights.append(w)
        biases.append(jnp.zeros((fout,), jnp.float32))

    alpha = jnp.full((1,), 0.25, jnp.float32)  # nn.PReLU() default
    return {"weights": weights, "biases": biases, "alpha": alpha}


def feedforwardnet_forward_ref(x, params):
    """Pure-JAX reference for correctness checking."""
    n_layers = len(params["weights"])
    alpha = params["alpha"][0]
    for layer_id in range(n_layers):
        x = x @ params["weights"][layer_id] + params["biases"][layer_id]
        if layer_id < n_layers - 1:
            x = jnp.where(x >= 0.0, x, alpha * x)
    return x


# ----------------------------------- main ------------------------------------
if __name__ == "__main__":
    # Small, SIGN-like shapes: 128 nodes, 256 input feats, 128 hidden, 64 out.
    # NOTE: at this size the kernel is launch/DMA-overhead bound; the tuning
    # above only becomes visible with M in the thousands.
    num_nodes, in_feats, hidden, out_feats, n_layers = 128, 256, 128, 64, 3

    key = jax.random.PRNGKey(0)
    key, xkey = jax.random.split(key)
    x = jax.random.normal(xkey, (num_nodes, in_feats), jnp.float32)

    params = init_feedforwardnet_params(key, in_feats, hidden, out_feats,
                                        n_layers)

    # f32 path: tight correctness check against the pure-JAX reference.
    out = feedforwardnet_forward(x, params)
    out = jax.block_until_ready(out)

    ref = feedforwardnet_forward_ref(x, params)
    assert out.shape == (num_nodes, out_feats)
    assert jnp.allclose(out, ref, atol=1e-4, rtol=1e-4), "mismatch vs reference"

    # bf16 path: exercises the wrapper-side weight cast (loose tolerance).
    out_bf16 = jax.block_until_ready(
        feedforwardnet_forward(x, params, compute_dtype=jnp.bfloat16))
    assert out_bf16.shape == (num_nodes, out_feats)
    assert float(jnp.max(jnp.abs(out_bf16 - ref))) < 0.5, "bf16 path diverged"

    print("KERNEL_OK")
</pallas_src>

<mosaic_0001>
module attributes {stable_mosaic.version = 11 : i64} {
  func.func @_ffn_fused_kernel(%arg0: i32, %arg1: memref<128x256xf32, #tpu.memory_space<vmem>>, %arg2: memref<256x128xf32, #tpu.memory_space<vmem>>, %arg3: memref<1x128xf32, #tpu.memory_space<vmem>>, %arg4: memref<128x128xf32, #tpu.memory_space<vmem>>, %arg5: memref<1x128xf32, #tpu.memory_space<vmem>>, %arg6: memref<128x128xf32, #tpu.memory_space<vmem>>, %arg7: memref<1x128xf32, #tpu.memory_space<vmem>>, %arg8: memref<1xf32, #tpu.memory_space<smem>>, %arg9: memref<128x128xf32, #tpu.memory_space<vmem>>) attributes {dimension_semantics = [#tpu.dimension_semantics<parallel>], iteration_bounds = array<i64: 1>, scalar_prefetch = 0 : i64, scratch_operands = 0 : i64, tpu.core_type = #tpu.core_type<tc>, window_params = [{transform_indices = @transform_0, window_bounds = array<i64: 128, 256>}, {pipeline_mode = #tpu.pipeline_mode<synchronous>, transform_indices = @transform_1, window_bounds = array<i64: 256, 128>}, {pipeline_mode = #tpu.pipeline_mode<synchronous>, transform_indices = @transform_2, window_bounds = array<i64: 1, 128>}, {pipeline_mode = #tpu.pipeline_mode<synchronous>, transform_indices = @transform_3, window_bounds = array<i64: 128, 128>}, {pipeline_mode = #tpu.pipeline_mode<synchronous>, transform_indices = @transform_4, window_bounds = array<i64: 1, 128>}, {pipeline_mode = #tpu.pipeline_mode<synchronous>, transform_indices = @transform_5, window_bounds = array<i64: 128, 128>}, {pipeline_mode = #tpu.pipeline_mode<synchronous>, transform_indices = @transform_6, window_bounds = array<i64: 1, 128>}, {transform_indices = @transform_7, window_bounds = array<i64: 1>}, {transform_indices = @transform_8, window_bounds = array<i64: 128, 128>}]} {
    %c0 = arith.constant 0 : index
    %0 = memref.load %arg8[%c0] : memref<1xf32, #tpu.memory_space<smem>>
    %c0_0 = arith.constant 0 : index
    %c0_1 = arith.constant 0 : index
    %1 = vector.load %arg1[%c0_0, %c0_1] : memref<128x256xf32, #tpu.memory_space<vmem>>, vector<128x256xf32>
    %c0_2 = arith.constant 0 : index
    %c0_3 = arith.constant 0 : index
    %2 = vector.load %arg3[%c0_2, %c0_3] : memref<1x128xf32, #tpu.memory_space<vmem>>, vector<1x128xf32>
    %c0_4 = arith.constant 0 : index
    %c0_5 = arith.constant 0 : index
    %3 = vector.load %arg2[%c0_4, %c0_5] : memref<256x128xf32, #tpu.memory_space<vmem>>, vector<256x128xf32>
    %cst = arith.constant dense<0.000000e+00> : vector<128x128xf32>
    %4 = tpu.matmul %1, %3, %cst {dimension_numbers = #tpu.dot_dimension_numbers<[1], [0], [0], [1], [0, 0, 1, 1], [], []>} : vector<128x256xf32>, vector<256x128xf32>, vector<128x128xf32> -> vector<128x128xf32>
    %5 = vector.broadcast %2 : vector<1x128xf32> to vector<128x128xf32>
    %6 = arith.addf %4, %5 : vector<128x128xf32>
    %cst_6 = arith.constant 0.000000e+00 : f32
    %7 = vector.broadcast %cst_6 : f32 to vector<128x128xf32>
    %8 = arith.cmpf oge, %6, %7 : vector<128x128xf32>
    %9 = vector.broadcast %0 : f32 to vector<128x128xf32>
    %10 = arith.mulf %9, %6 : vector<128x128xf32>
    %11 = arith.select %8, %6, %10 : vector<128x128xi1>, vector<128x128xf32>
    %c0_7 = arith.constant 0 : index
    %c0_8 = arith.constant 0 : index
    %12 = vector.load %arg5[%c0_7, %c0_8] : memref<1x128xf32, #tpu.memory_space<vmem>>, vector<1x128xf32>
    %c0_9 = arith.constant 0 : index
    %c0_10 = arith.constant 0 : index
    %13 = vector.load %arg4[%c0_9, %c0_10] : memref<128x128xf32, #tpu.memory_space<vmem>>, vector<128x128xf32>
    %cst_11 = arith.constant dense<0.000000e+00> : vector<128x128xf32>
    %14 = tpu.matmul %11, %13, %cst_11 {dimension_numbers = #tpu.dot_dimension_numbers<[1], [0], [0], [1], [0, 0, 1, 1], [], []>} : vector<128x128xf32>, vector<128x128xf32>, vector<128x128xf32> -> vector<128x128xf32>
    %15 = vector.broadcast %12 : vector<1x128xf32> to vector<128x128xf32>
    %16 = arith.addf %14, %15 : vector<128x128xf32>
    %cst_12 = arith.constant 0.000000e+00 : f32
    %17 = vector.broadcast %cst_12 : f32 to vector<128x128xf32>
    %18 = arith.cmpf oge, %16, %17 : vector<128x128xf32>
    %19 = vector.broadcast %0 : f32 to vector<128x128xf32>
    %20 = arith.mulf %19, %16 : vector<128x128xf32>
    %21 = arith.select %18, %16, %20 : vector<128x128xi1>, vector<128x128xf32>
    %c0_13 = arith.constant 0 : index
    %c0_14 = arith.constant 0 : index
    %22 = vector.load %arg7[%c0_13, %c0_14] : memref<1x128xf32, #tpu.memory_space<vmem>>, vector<1x128xf32>
    %c0_15 = arith.constant 0 : index
    %c0_16 = arith.constant 0 : index
    %23 = vector.load %arg6[%c0_15, %c0_16] : memref<128x128xf32, #tpu.memory_space<vmem>>, vector<128x128xf32>
    %cst_17 = arith.constant dense<0.000000e+00> : vector<128x128xf32>
    %24 = tpu.matmul %21, %23, %cst_17 {dimension_numbers = #tpu.dot_dimension_numbers<[1], [0], [0], [1], [0, 0, 1, 1], [], []>} : vector<128x128xf32>, vector<128x128xf32>, vector<128x128xf32> -> vector<128x128xf32>
    %25 = vector.broadcast %22 : vector<1x128xf32> to vector<128x128xf32>
    %26 = arith.addf %24, %25 : vector<128x128xf32>
    %c0_18 = arith.constant 0 : index
    %c0_19 = arith.constant 0 : index
    %27 = vector.load %arg9[%c0_18, %c0_19] : memref<128x128xf32, #tpu.memory_space<vmem>>, vector<128x128xf32>
    tpu.vector_store %arg9[%c0_18, %c0_19], %26 {strides = array<i32>} : memref<128x128xf32, #tpu.memory_space<vmem>>, vector<128x128xf32>,
    return
  }
  func.func @transform_0(%arg0: i32) -> (i32, i32) {
    %c0_i32 = arith.constant 0 : i32
    %c0_i32_0 = arith.constant 0 : i32
    return %arg0, %c0_i32 : i32, i32
  }
  func.func @transform_1(%arg0: i32) -> (i32, i32) {
    %c0_i32 = arith.constant 0 : i32
    %c0_i32_0 = arith.constant 0 : i32
    %c0_i32_1 = arith.constant 0 : i32
    return %c0_i32, %c0_i32_0 : i32, i32
  }
  func.func @transform_2(%arg0: i32) -> (i32, i32) {
    %c0_i32 = arith.constant 0 : i32
    %c0_i32_0 = arith.constant 0 : i32
    %c0_i32_1 = arith.constant 0 : i32
    return %c0_i32, %c0_i32_0 : i32, i32
  }
  func.func @transform_3(%arg0: i32) -> (i32, i32) {
    %c0_i32 = arith.constant 0 : i32
    %c0_i32_0 = arith.constant 0 : i32
    %c0_i32_1 = arith.constant 0 : i32
    return %c0_i32, %c0_i32_0 : i32, i32
  }
  func.func @transform_4(%arg0: i32) -> (i32, i32) {
    %c0_i32 = arith.constant 0 : i32
    %c0_i32_0 = arith.constant 0 : i32
    %c0_i32_1 = arith.constant 0 : i32
    return %c0_i32, %c0_i32_0 : i32, i32
  }
  func.func @transform_5(%arg0: i32) -> (i32, i32) {
    %c0_i32 = arith.constant 0 : i32
    %c0_i32_0 = arith.constant 0 : i32
    %c0_i32_1 = arith.constant 0 : i32
    return %c0_i32, %c0_i32_0 : i32, i32
  }
  func.func @transform_6(%arg0: i32) -> (i32, i32) {
    %c0_i32 = arith.constant 0 : i32
    %c0_i32_0 = arith.constant 0 : i32
    %c0_i32_1 = arith.constant 0 : i32
    return %c0_i32, %c0_i32_0 : i32, i32
  }
  func.func @transform_7(%arg0: i32) -> i32 {
    %c0_i32 = arith.constant 0 : i32
    %c0_i32_0 = arith.constant 0 : i32
    return %c0_i32 : i32
  }
  func.func @transform_8(%arg0: i32) -> (i32, i32) {
    %c0_i32 = arith.constant 0 : i32
    %c0_i32_0 = arith.constant 0 : i32
    return %arg0, %c0_i32 : i32, i32
  }
}

module attributes {stable_mosaic.version = 11 : i64} {
  func.func @_ffn_fused_kernel(%arg0: i32, %arg1: memref<128x256xf32, #tpu.memory_space<vmem>>, %arg2: memref<256x128xf32, #tpu.memory_space<vmem>>, %arg3: memref<1x128xf32, #tpu.memory_space<vmem>>, %arg4: memref<128x128xf32, #tpu.memory_space<vmem>>, %arg5: memref<1x128xf32, #tpu.memory_space<vmem>>, %arg6: memref<128x128xf32, #tpu.memory_space<vmem>>, %arg7: memref<1x128xf32, #tpu.memory_space<vmem>>, %arg8: memref<1xf32, #tpu.memory_space<smem>>, %arg9: memref<128x128xf32, #tpu.memory_space<vmem>>) attributes {dimension_semantics = [#tpu.dimension_semantics<parallel>], iteration_bounds = array<i64: 1>, scalar_prefetch = 0 : i64, scratch_operands = 0 : i64, tpu.core_type = #tpu.core_type<tc>, window_params = [{transform_indices = @transform_0, window_bounds = array<i64: 128, 256>}, {pipeline_mode = #tpu.pipeline_mode<synchronous>, transform_indices = @transform_1, window_bounds = array<i64: 256, 128>}, {pipeline_mode = #tpu.pipeline_mode<synchronous>, transform_indices = @transform_2, window_bounds = array<i64: 1, 128>}, {pipeline_mode = #tpu.pipeline_mode<synchronous>, transform_indices = @transform_3, window_bounds = array<i64: 128, 128>}, {pipeline_mode = #tpu.pipeline_mode<synchronous>, transform_indices = @transform_4, window_bounds = array<i64: 1, 128>}, {pipeline_mode = #tpu.pipeline_mode<synchronous>, transform_indices = @transform_5, window_bounds = array<i64: 128, 128>}, {pipeline_mode = #tpu.pipeline_mode<synchronous>, transform_indices = @transform_6, window_bounds = array<i64: 1, 128>}, {transform_indices = @transform_7, window_bounds = array<i64: 1>}, {transform_indices = @transform_8, window_bounds = array<i64: 128, 128>}]} {
    %c0 = arith.constant 0 : index
    %0 = memref.load %arg8[%c0] : memref<1xf32, #tpu.memory_space<smem>>
    %c0_0 = arith.constant 0 : index
    %c0_1 = arith.constant 0 : index
    %1 = vector.load %arg1[%c0_0, %c0_1] : memref<128x256xf32, #tpu.memory_space<vmem>>, vector<128x256xf32>
    %c0_2 = arith.constant 0 : index
    %c0_3 = arith.constant 0 : index
    %2 = vector.load %arg3[%c0_2, %c0_3] : memref<1x128xf32, #tpu.memory_space<vmem>>, vector<1x128xf32>
    %c0_4 = arith.constant 0 : index
    %c0_5 = arith.constant 0 : index
    %3 = vector.load %arg2[%c0_4, %c0_5] : memref<256x128xf32, #tpu.memory_space<vmem>>, vector<256x128xf32>
    %cst = arith.constant dense<0.000000e+00> : vector<128x128xf32>
    %4 = tpu.matmul %1, %3, %cst {dimension_numbers = #tpu.dot_dimension_numbers<[1], [0], [0], [1], [0, 0, 1, 1], [], []>} : vector<128x256xf32>, vector<256x128xf32>, vector<128x128xf32> -> vector<128x128xf32>
    %5 = vector.broadcast %2 : vector<1x128xf32> to vector<128x128xf32>
    %6 = arith.addf %4, %5 : vector<128x128xf32>
    %cst_6 = arith.constant 0.000000e+00 : f32
    %7 = vector.broadcast %cst_6 : f32 to vector<128x128xf32>
    %8 = arith.cmpf oge, %6, %7 : vector<128x128xf32>
    %9 = vector.broadcast %0 : f32 to vector<128x128xf32>
    %10 = arith.mulf %9, %6 : vector<128x128xf32>
    %11 = arith.select %8, %6, %10 : vector<128x128xi1>, vector<128x128xf32>
    %c0_7 = arith.constant 0 : index
    %c0_8 = arith.constant 0 : index
    %12 = vector.load %arg5[%c0_7, %c0_8] : memref<1x128xf32, #tpu.memory_space<vmem>>, vector<1x128xf32>
    %c0_9 = arith.constant 0 : index
    %c0_10 = arith.constant 0 : index
    %13 = vector.load %arg4[%c0_9, %c0_10] : memref<128x128xf32, #tpu.memory_space<vmem>>, vector<128x128xf32>
    %cst_11 = arith.constant dense<0.000000e+00> : vector<128x128xf32>
    %14 = tpu.matmul %11, %13, %cst_11 {dimension_numbers = #tpu.dot_dimension_numbers<[1], [0], [0], [1], [0, 0, 1, 1], [], []>} : vector<128x128xf32>, vector<128x128xf32>, vector<128x128xf32> -> vector<128x128xf32>
    %15 = vector.broadcast %12 : vector<1x128xf32> to vector<128x128xf32>
    %16 = arith.addf %14, %15 : vector<128x128xf32>
    %cst_12 = arith.constant 0.000000e+00 : f32
    %17 = vector.broadcast %cst_12 : f32 to vector<128x128xf32>
    %18 = arith.cmpf oge, %16, %17 : vector<128x128xf32>
    %19 = vector.broadcast %0 : f32 to vector<128x128xf32>
    %20 = arith.mulf %19, %16 : vector<128x128xf32>
    %21 = arith.select %18, %16, %20 : vector<128x128xi1>, vector<128x128xf32>
    %c0_13 = arith.constant 0 : index
    %c0_14 = arith.constant 0 : index
    %22 = vector.load %arg7[%c0_13, %c0_14] : memref<1x128xf32, #tpu.memory_space<vmem>>, vector<1x128xf32>
    %c0_15 = arith.constant 0 : index
    %c0_16 = arith.constant 0 : index
    %23 = vector.load %arg6[%c0_15, %c0_16] : memref<128x128xf32, #tpu.memory_space<vmem>>, vector<128x128xf32>
    %cst_17 = arith.constant dense<0.000000e+00> : vector<128x128xf32>
    %24 = tpu.matmul %21, %23, %cst_17 {dimension_numbers = #tpu.dot_dimension_numbers<[1], [0], [0], [1], [0, 0, 1, 1], [], []>} : vector<128x128xf32>, vector<128x128xf32>, vector<128x128xf32> -> vector<128x128xf32>
    %25 = vector.broadcast %22 : vector<1x128xf32> to vector<128x128xf32>
    %26 = arith.addf %24, %25 : vector<128x128xf32>
    %c0_18 = arith.constant 0 : index
    %c0_19 = arith.constant 0 : index
    %27 = vector.load %arg9[%c0_18, %c0_19] : memref<128x128xf32, #tpu.memory_space<vmem>>, vector<128x128xf32>
    tpu.vector_store %arg9[%c0_18, %c0_19], %26 {strides = array<i32>} : memref<128x128xf32, #tpu.memory_space<vmem>>, vector<128x128xf32>,
    return
  }
  func.func @transform_0(%arg0: i32) -> (i32, i32) {
    %c0_i32 = arith.constant 0 : i32
    %c0_i32_0 = arith.constant 0 : i32
    return %arg0, %c0_i32 : i32, i32
  }
  func.func @transform_1(%arg0: i32) -> (i32, i32) {
    %c0_i32 = arith.constant 0 : i32
    %c0_i32_0 = arith.constant 0 : i32
    %c0_i32_1 = arith.constant 0 : i32
    return %c0_i32, %c0_i32_0 : i32, i32
  }
  func.func @transform_2(%arg0: i32) -> (i32, i32) {
    %c0_i32 = arith.constant 0 : i32
    %c0_i32_0 = arith.constant 0 : i32
    %c0_i32_1 = arith.constant 0 : i32
    return %c0_i32, %c0_i32_0 : i32, i32
  }
  func.func @transform_3(%arg0: i32) -> (i32, i32) {
    %c0_i32 = arith.constant 0 : i32
    %c0_i32_0 = arith.constant 0 : i32
    %c0_i32_1 = arith.constant 0 : i32
    return %c0_i32, %c0_i32_0 : i32, i32
  }
  func.func @transform_4(%arg0: i32) -> (i32, i32) {
    %c0_i32 = arith.constant 0 : i32
    %c0_i32_0 = arith.constant 0 : i32
    %c0_i32_1 = arith.constant 0 : i32
    return %c0_i32, %c0_i32_0 : i32, i32
  }
  func.func @transform_5(%arg0: i32) -> (i32, i32) {
    %c0_i32 = arith.constant 0 : i32
    %c0_i32_0 = arith.constant 0 : i32
    %c0_i32_1 = arith.constant 0 : i32
    return %c0_i32, %c0_i32_0 : i32, i32
  }
  func.func @transform_6(%arg0: i32) -> (i32, i32) {
    %c0_i32 = arith.constant 0 : i32
    %c0_i32_0 = arith.constant 0 : i32
    %c0_i32_1 = arith.constant 0 : i32
    return %c0_i32, %c0_i32_0 : i32, i32
  }
  func.func @transform_7(%arg0: i32) -> i32 {
    %c0_i32 = arith.constant 0 : i32
    %c0_i32_0 = arith.constant 0 : i32
    return %c0_i32 : i32
  }
  func.func @transform_8(%arg0: i32) -> (i32, i32) {
    %c0_i32 = arith.constant 0 : i32
    %c0_i32_0 = arith.constant 0 : i32
    return %arg0, %c0_i32 : i32, i32
  }
}

</mosaic_0001>

<bundles_post_ra>
// kernel: tpu_custom_call.1
= control target key start
LH: loop header
LB: loop body
LE: loop exit
PB: predicated region body
PF: predicated region fallthrough
CT: control target
= control target key end

     0   :  { %14 = vsyncpa [#allocation4], 0  ;;  %s1310_s0 = inlined_call_operand.hbm [shape: f32[128,256], index: 0, kind: input, shape index: {}]   ;;  %s1311_s1 = inlined_call_operand.hbm [shape: f32[256,128], index: 1, kind: input, shape index: {}]   ;;  %s1312_s2 = inlined_call_operand.vmem [shape: f32[1,128], index: 2, kind: input, shape index: {}]   ;;  %s1313_s3 = inlined_call_operand.hbm [shape: f32[128,128], index: 3, kind: input, shape index: {}]   ;;  %s1314_s4 = inlined_call_operand.vmem [shape: f32[1,128], index: 4, kind: input, shape index: {}]   ;;  %s1315_s5 = inlined_call_operand.hbm [shape: f32[128,128], index: 5, kind: input, shape index: {}]   ;;  %s1316_s6 = inlined_call_operand.vmem [shape: f32[1,128], index: 6, kind: input, shape index: {}]   ;;  %s1317_s7 = inlined_call_operand.<no memory space> [shape: f32[1], index: 7, kind: input, shape index: {}]   ;;  %s1318_s8 = inlined_call_operand.hbm [shape: f32[128,128], index: 8, kind: output, shape index: {}]  }
   0x1   :  { %15 = vsyncpa [#allocation7], 0 }
   0x2   :  { %16 = vsyncpa [#allocation10], 0 }
   0x3   :  { %17 = vsyncpa [#allocation5], 0  ;;  %s1147_s27 = smov [#allocation6]  }
   0x4   :  { %s35_s28 = sshll.u32 %s1147_s27, 4  ;;  %s36_s28 = int_to_ptr.vmem [resolvable:$true] %s35_s28 }
   0x5   :  { %s1047_s29 = scalar_lea.vmem %s36_s28, 4096  ;;  %p1052_p1 = scmp.lt.s32.totalorder %s36_s28, %s36_s28 }
   0x6   :  { %p1048_p0 = scmp.ne.s32.totalorder %s36_s28, %s1047_s29  ;;  %p1053_p2 = scmp.lt.s32.totalorder %s1047_s29, %s1047_s29 }
   0x8   :  { %p1054_p3 = por %p1053_p2, %p1052_p1 }
   0xa   :  { %p1055_p4 = pnand %p1054_p3, %p1048_p0 }
   0xc   :  { %1058 = shalt.err (!%p1055_p4)
}
   0xd   :  { %s1148_s30 = smov 128   ;;  %s1149_s9 = smov 8  }
   0xe   :  { %41 = dma.hbm_to_vmem [thread:$0]  %s1311_s1, 4096, %s36_s28, [#allocation7], %s1148_s30, %s1148_s30, %s1149_s9  }
   0xf   :  { %s1150_s12 = smov [#allocation3]  }
  0x10   :  { %s23_s13 = sshll.u32 %s1150_s12, 4  ;;  %s24_s13 = int_to_ptr.vmem [resolvable:$true] %s23_s13 }
  0x11   :  { %s1067_s14 = scalar_lea.vmem %s24_s13, 4096  ;;  %p1072_p6 = scmp.lt.s32.totalorder %s24_s13, %s24_s13 }
  0x12   :  { %p1068_p5 = scmp.ne.s32.totalorder %s24_s13, %s1067_s14  ;;  %p1073_p7 = scmp.lt.s32.totalorder %s1067_s14, %s1067_s14 }
  0x14   :  { %p1074_p8 = por %p1073_p7, %p1072_p6 }
  0x16   :  { %p1075_p9 = pnand %p1074_p8, %p1068_p5 }
  0x18   :  { %1078 = shalt.err (!%p1075_p9)
}
  0x19   :  { %s1151_s15 = smov 256   ;;  %s1152_s16 = smov 16  }
  0x1a   :  { %29 = dma.hbm_to_vmem [thread:$0]  %s1310_s0, 4096, %s24_s13, [#allocation4], %s1151_s15, %s1151_s15, %s1152_s16  }
  0x1b   :  { %s1153_s19 = smov [#allocation8]   ;;  %s1154_s21 = smov [#allocation9]  }
  0x1c   :  { %s49_s20 = sshll.u32 %s1153_s19, 4  ;;  %s63_s1 = sshll.u32 %s1154_s21, 4  ;;  %s50_s20 = int_to_ptr.vmem [resolvable:$true] %s49_s20  ;;  %s64_s1 = int_to_ptr.vmem [resolvable:$true] %s63_s1 }
  0x1d   :  { %s1087_s22 = scalar_lea.vmem %s50_s20, 2048  ;;  %p1092_p11 = scmp.lt.s32.totalorder %s50_s20, %s50_s20 }
  0x1e   :  { %p1088_p10 = scmp.ne.s32.totalorder %s50_s20, %s1087_s22  ;;  %p1093_p12 = scmp.lt.s32.totalorder %s1087_s22, %s1087_s22 }
  0x20   :  { %p1094_p13 = por %p1093_p12, %p1092_p11 }
  0x22   :  { %p1095_p0 = pnand %p1094_p13, %p1088_p10 }
  0x24   :  { %1098 = shalt.err (!%p1095_p0)
}
  0x25   :  { %55 = dma.hbm_to_vmem [thread:$0]  %s1313_s3, 2048, %s50_s20, [#allocation7], %s1148_s30, %s1148_s30, %s1149_s9  }
  0x26   :  { %s1107_s0 = scalar_lea.vmem %s64_s1, 2048  ;;  %p1112_p2 = scmp.lt.s32.totalorder %s64_s1, %s64_s1 }
  0x27   :  { %p1108_p1 = scmp.ne.s32.totalorder %s64_s1, %s1107_s0  ;;  %p1113_p3 = scmp.lt.s32.totalorder %s1107_s0, %s1107_s0 }
  0x29   :  { %p1114_p4 = por %p1113_p3, %p1112_p2 }
  0x2b   :  { %p1115_p5 = pnand %p1114_p4, %p1108_p1 }
  0x2d   :  { %1118 = shalt.err (!%p1115_p5)
}
  0x2e   :  { %69 = dma.hbm_to_vmem [thread:$0]  %s1315_s5, 2048, %s64_s1, [#allocation10], %s1148_s30, %s1148_s30, %s1149_s9  }
  0x2f   :  { %1139 = dma.done.wait [#allocation4], 4096  }
  0x30   :  { %1140 = vsyncadd [#allocation4], 4294963200 }
  0x31   :  { %1141 = dma.done.wait [#allocation7], 6144  }
  0x32   :  { %1142 = vsyncadd [#allocation7], 4294961152 }
  0x33   :  { %1143 = dma.done.wait [#allocation10], 2048  }
  0x34   :  { %1144 = vsyncadd [#allocation10], 4294965248  ;;  %v151_v0 = vld [vmem:[#allocation6 + $0xf8] sm:$0xff]  ;;  %v150_v2 = vld [vmem:[#allocation6 + $0xf0] sm:$0xff] }
  0x35   :  { %v135_v1 = vld [vmem:[#allocation6 + $0x78] sm:$0xff]  ;;  %774 = vmatprep.subr.mxu0 %v151_v0  ;;  %v134_v3 = vld [vmem:[#allocation6 + $0x70] sm:$0xff]  ;;  %v149_v4 = vld [vmem:[#allocation6 + $0xe8] sm:$0xff] }
  0x36   :  { %775 = vmatpush3.msra.mxu0 %v135_v1  ;;  %v133_v5 = vld [vmem:[#allocation6 + $0x68] sm:$0xff]  ;;  %v148_v6 = vld [vmem:[#allocation6 + $0xe0] sm:$0xff]  ;;  %v147_v8 = vld [vmem:[#allocation6 + $0xd8] sm:$0xff] }
  0x37   :  { %776 = vmatprep.subr.mxu0 %v150_v2  ;;  %v132_v7 = vld [vmem:[#allocation6 + $0x60] sm:$0xff]  ;;  %v131_v9 = vld [vmem:[#allocation6 + $0x58] sm:$0xff]  ;;  %v146_v10 = vld [vmem:[#allocation6 + $0xd0] sm:$0xff] }
  0x38   :  { %777 = vmatpush3.msra.mxu0 %v134_v3  ;;  %v130_v11 = vld [vmem:[#allocation6 + $0x50] sm:$0xff]  ;;  %v145_v12 = vld [vmem:[#allocation6 + $0xc8] sm:$0xff]  ;;  %v144_v15 = vld [vmem:[#allocation6 + $0xc0] sm:$0xff] }
  0x39   :  { %778 = vmatprep.subr.mxu0 %v149_v4  ;;  %v88_v13 = vld [vmem:[#allocation3 + $0x8] sm:$0xff]  ;;  %v128_v16 = vld [vmem:[#allocation6 + $0x40] sm:$0xff]  ;;  %v143_v17 = vld [vmem:[#allocation6 + $0xb8] sm:$0xff] }
  0x3a   :  { %779 = vmatpush3.msra.mxu0 %v133_v5  ;;  %v129_v14 = vld [vmem:[#allocation6 + $0x48] sm:$0xff]  ;;  %222 = vmatprep.mubr.f32.mxu0 %v88_v13  ;;  %v127_v18 = vld [vmem:[#allocation6 + $0x38] sm:$0xff]  ;;  %v142_v19 = vld [vmem:[#allocation6 + $0xb0] sm:$0xff] }
  0x3b   :  { %780 = vmatprep.subr.mxu0 %v148_v6  ;;  %v126_v20 = vld [vmem:[#allocation6 + $0x30] sm:$0xff]  ;;  %v141_v21 = vld [vmem:[#allocation6 + $0xa8] sm:$0xff]  ;;  %v140_v23 = vld [vmem:[#allocation6 + $0xa0] sm:$0xff] }
  0x3c   :  { %781 = vmatpush3.msra.mxu0 %v132_v7  ;;  %v125_v22 = vld [vmem:[#allocation6 + $0x28] sm:$0xff]  ;;  %v124_v24 = vld [vmem:[#allocation6 + $0x20] sm:$0xff]  ;;  %v368_v25 = vld [vmem:[#allocation8 + $0x78] sm:$0xff] }
  0x3d   :  { %782 = vmatprep.subr.mxu0 %v147_v8  ;;  %v367_v26 = vld [vmem:[#allocation8 + $0x70] sm:$0xff]  ;;  %v139_v27 = vld [vmem:[#allocation6 + $0x98] sm:$0xff]  ;;  %918 = vmatprep.subr.mxu1 %v368_v25  ;;  %v366_v29 = vld [vmem:[#allocation8 + $0x68] sm:$0xff] }
  0x3e   :  { %783 = vmatpush3.msra.mxu0 %v131_v9  ;;  %v123_v28 = vld [vmem:[#allocation6 + $0x18] sm:$0xff]  ;;  %919 = vmatpush3.msra.mxu1 %v368_v25  ;;  %v138_v30 = vld [vmem:[#allocation6 + $0x90] sm:$0xff]  ;;  %v365_v32 = vld [vmem:[#allocation8 + $0x60] sm:$0xff] }
  0x3f   :  { %784 = vmatprep.subr.mxu0 %v146_v10  ;;  %920 = vmatprep.subr.mxu1 %v367_v26  ;;  %v122_v31 = vld [vmem:[#allocation6 + $0x10] sm:$0xff]  ;;  %v137_v33 = vld [vmem:[#allocation6 + $0x88] sm:$0xff]  ;;  %v364_v35 = vld [vmem:[#allocation8 + $0x58] sm:$0xff] }
  0x40   :  { %785 = vmatpush3.msra.mxu0 %v130_v11  ;;  %921 = vmatpush3.msra.mxu1 %v367_v26  ;;  %v121_v34 = vld [vmem:[#allocation6 + $0x8] sm:$0xff]  ;;  %v136_v36 = vld [vmem:[#allocation6 + $0x80] sm:$0xff]  ;;  %v363_v38 = vld [vmem:[#allocation8 + $0x50] sm:$0xff] }
  0x41   :  { %786 = vmatprep.subr.mxu0 %v145_v12  ;;  %922 = vmatprep.subr.mxu1 %v366_v29  ;;  %v120_v37 = vld [vmem:[#allocation6] sm:$0xff]  ;;  %v90_v40 = vld [vmem:[#allocation3 + $0x18] sm:$0xff]  ;;  %v362_v41 = vld [vmem:[#allocation8 + $0x48] sm:$0xff] }
  0x42   :  { %787 = vmatpush3.msra.mxu0 %v129_v14  ;;  %923 = vmatpush3.msra.mxu1 %v366_v29  ;;  %v87_v39 = vld [vmem:[#allocation3] sm:$0xff]  ;;  %v89_v43 = vld [vmem:[#allocation3 + $0x10] sm:$0xff]  ;;  %v92_v44 = vld [vmem:[#allocation3 + $0x28] sm:$0xff] }
  0x43   :  { %788 = vmatprep.subr.mxu0 %v144_v15  ;;  %924 = vmatprep.subr.mxu1 %v365_v32  ;;  %v361_v42 = vld [vmem:[#allocation8 + $0x40] sm:$0xff]  ;;  %v360_v45 = vld [vmem:[#allocation8 + $0x38] sm:$0xff]  ;;  %v93_v48 = vld [vmem:[#allocation3 + $0x30] sm:$0xff] }
  0x44   :  { %789 = vmatpush3.msra.mxu0 %v128_v16  ;;  %925 = vmatpush3.msra.mxu1 %v365_v32  ;;  %v91_v46 = vld [vmem:[#allocation3 + $0x20] sm:$0xff]  ;;  %v94_v47 = vld [vmem:[#allocation3 + $0x38] sm:$0xff]  ;;  %v96_v49 = vld [vmem:[#allocation3 + $0x48] sm:$0xff] }
  0x45   :  { %790 = vmatprep.subr.mxu0 %v143_v17  ;;  %926 = vmatprep.subr.mxu1 %v364_v35  ;;  %v95_v50 = vld [vmem:[#allocation3 + $0x40] sm:$0xff]  ;;  %v98_v51 = vld [vmem:[#allocation3 + $0x58] sm:$0xff]  ;;  %v97_v52 = vld [vmem:[#allocation3 + $0x50] sm:$0xff] }
  0x46   :  { %791 = vmatpush3.msra.mxu0 %v127_v18  ;;  %927 = vmatpush3.msra.mxu1 %v364_v35  ;;  %v100_v53 = vld [vmem:[#allocation3 + $0x68] sm:$0xff]  ;;  %v99_v54 = vld [vmem:[#allocation3 + $0x60] sm:$0xff]  ;;  %v102_v55 = vld [vmem:[#allocation3 + $0x78] sm:$0xff] }
  0x47   :  { %792 = vmatprep.subr.mxu0 %v142_v19  ;;  %928 = vmatprep.subr.mxu1 %v363_v38  ;;  %v101_v56 = vld [vmem:[#allocation3 + $0x70] sm:$0xff]  ;;  %v104_v57 = vld [vmem:[#allocation3 + $0x88] sm:$0xff]  ;;  %v103_v58 = vld [vmem:[#allocation3 + $0x80] sm:$0xff] }
  0x48   :  { %793 = vmatpush3.msra.mxu0 %v126_v20  ;;  %929 = vmatpush3.msra.mxu1 %v363_v38  ;;  %v106_v59 = vld [vmem:[#allocation3 + $0x98] sm:$0xff]  ;;  %v105_v60 = vld [vmem:[#allocation3 + $0x90] sm:$0xff]  ;;  %v108_v61 = vld [vmem:[#allocation3 + $0xa8] sm:$0xff] }
  0x49   :  { %794 = vmatprep.subr.mxu0 %v141_v21  ;;  %930 = vmatprep.subr.mxu1 %v362_v41  ;;  %v107_v62 = vld [vmem:[#allocation3 + $0xa0] sm:$0xff]  ;;  %v110_v63 = vld [vmem:[#allocation3 + $0xb8] sm:$0xff]  ;;  %v109_v0 = vld [vmem:[#allocation3 + $0xb0] sm:$0xff] }
  0x4a   :  { %795 = vmatpush3.msra.mxu0 %v125_v22  ;;  %931 = vmatpush3.msra.mxu1 %v362_v41  ;;  %v112_v1 = vld [vmem:[#allocation3 + $0xc8] sm:$0xff]  ;;  %v111_v2 = vld [vmem:[#allocation3 + $0xc0] sm:$0xff]  ;;  %v114_v3 = vld [vmem:[#allocation3 + $0xd8] sm:$0xff]  ;;  %v1230_v22 = vstv %s1317_s7 }
  0x4b   :  { %796 = vmatprep.subr.mxu0 %v140_v23  ;;  %932 = vmatprep.subr.mxu1 %v361_v42  ;;  %v113_v4 = vld [vmem:[#allocation3 + $0xd0] sm:$0xff]  ;;  %v116_v5 = vld [vmem:[#allocation3 + $0xe8] sm:$0xff]  ;;  %v115_v6 = vld [vmem:[#allocation3 + $0xe0] sm:$0xff] }
  0x4c   :  { %797 = vmatpush3.msra.mxu0 %v124_v24  ;;  %933 = vmatpush3.msra.mxu1 %v361_v42  ;;  %v118_v7 = vld [vmem:[#allocation3 + $0xf8] sm:$0xff]  ;;  %v117_v8 = vld [vmem:[#allocation3 + $0xf0] sm:$0xff]  ;;  %v358_v10 = vld [vmem:[#allocation8 + $0x28] sm:$0xff] }
  0x4d   :  { %798 = vmatprep.subr.mxu0 %v139_v27  ;;  %934 = vmatprep.subr.mxu1 %v360_v45  ;;  %v359_v9 = vld [vmem:[#allocation8 + $0x30] sm:$0xff]  ;;  %v357_v11 = vld [vmem:[#allocation8 + $0x20] sm:$0xff]  ;;  %v356_v12 = vld [vmem:[#allocation8 + $0x18] sm:$0xff] }
  0x4e   :  { %799 = vmatpush3.msra.mxu0 %v123_v28  ;;  %935 = vmatpush3.msra.mxu1 %v360_v45  ;;  %v355_v13 = vld [vmem:[#allocation8 + $0x10] sm:$0xff]  ;;  %v354_v14 = vld [vmem:[#allocation8 + $0x8] sm:$0xff]  ;;  %v353_v15 = vld [vmem:[#allocation8] sm:$0xff] }
  0x4f   :  { %800 = vmatprep.subr.mxu0 %v138_v30  ;;  %936 = vmatprep.subr.mxu1 %v359_v9  ;;  %v584_v16 = vld [vmem:[#allocation9 + $0x78] sm:$0xff]  ;;  %v1225_v18 = vld [vmem:[%s1312_s2] ss:$0 sm:$0xff] }
  0x50   :  { %801 = vmatpush3.msra.mxu0 %v122_v31  ;;  %937 = vmatpush3.msra.mxu1 %v359_v9 }
  0x51   :  { %802 = vmatprep.subr.mxu0 %v137_v33  ;;  %938 = vmatprep.subr.mxu1 %v358_v10 }
  0x52   :  { %803 = vmatpush3.msra.mxu0 %v121_v34  ;;  %939 = vmatpush3.msra.mxu1 %v358_v10 }
  0x53   :  { %804 = vmatprep.subr.mxu0 %v136_v36  ;;  %940 = vmatprep.subr.mxu1 %v357_v11  ;;  %v583_v36 = vld [vmem:[#allocation9 + $0x70] sm:$0xff] }
  0x54   :  { %805 = vmatpush3.msra.mxu0 %v120_v37  ;;  %941 = vmatpush3.msra.mxu1 %v357_v11 }
  0x55   :  { %223 = vmatmul.mubr.f32.vlgmr.msra.gmra.mxu0 %v87_v39  ;;  %942 = vmatprep.subr.mxu1 %v356_v12 }
  0x56   :  { %227 = vmatprep.mubr.f32.mxu0 %v90_v40  ;;  %943 = vmatpush3.msra.mxu1 %v356_v12  ;;  %v582_v40 = vld [vmem:[#allocation9 + $0x68] sm:$0xff]  ;;  %v573_v12 = vld [vmem:[#allocation9 + $0x20] sm:$0xff] }
  0x57   :  { %944 = vmatprep.subr.mxu1 %v355_v13 }
  0x58   :  { %945 = vmatpush3.msra.mxu1 %v355_v13 }
  0x59   :  { %228 = vmatmul.mubr.f32.gmra.mxu0 %v89_v43  ;;  %946 = vmatprep.subr.mxu1 %v354_v14 }
  0x5a   :  { %232 = vmatprep.mubr.f32.mxu0 %v92_v44  ;;  %947 = vmatpush3.msra.mxu1 %v354_v14  ;;  %v581_v44 = vld [vmem:[#allocation9 + $0x60] sm:$0xff] }
  0x5b   :  { %948 = vmatprep.subr.mxu1 %v353_v15 }
  0x5c   :  { %949 = vmatpush3.msra.mxu1 %v353_v15 }
  0x5d   :  { %233 = vmatmul.mubr.f32.gmra.mxu0 %v91_v46  ;;  %974 = vmatprep.subr.mxu1 %v584_v16 }
  0x5e   :  { %237 = vmatprep.mubr.f32.mxu0 %v94_v47 }
  0x61   :  { %238 = vmatmul.mubr.f32.gmra.mxu0 %v93_v48  ;;  %v580_v48 = vld [vmem:[#allocation9 + $0x58] sm:$0xff] }
  0x62   :  { %242 = vmatprep.mubr.f32.mxu0 %v96_v49 }
  0x65   :  { %243 = vmatmul.mubr.f32.gmra.mxu0 %v95_v50 }
  0x66   :  { %247 = vmatprep.mubr.f32.mxu0 %v98_v51 }
  0x69   :  { %248 = vmatmul.mubr.f32.gmra.mxu0 %v97_v52  ;;  %v579_v52 = vld [vmem:[#allocation9 + $0x50] sm:$0xff] }
  0x6a   :  { %252 = vmatprep.mubr.f32.mxu0 %v100_v53 }
  0x6d   :  { %253 = vmatmul.mubr.f32.gmra.mxu0 %v99_v54 }
  0x6e   :  { %257 = vmatprep.mubr.f32.mxu0 %v102_v55 }
  0x71   :  { %258 = vmatmul.mubr.f32.gmra.mxu0 %v101_v56  ;;  %v578_v56 = vld [vmem:[#allocation9 + $0x48] sm:$0xff] }
  0x72   :  { %262 = vmatprep.mubr.f32.mxu0 %v104_v57 }
  0x75   :  { %263 = vmatmul.mubr.f32.gmra.mxu0 %v103_v58 }
  0x76   :  { %267 = vmatprep.mubr.f32.mxu0 %v106_v59 }
  0x79   :  { %268 = vmatmul.mubr.f32.gmra.mxu0 %v105_v60  ;;  %v577_v60 = vld [vmem:[#allocation9 + $0x40] sm:$0xff] }
  0x7a   :  { %272 = vmatprep.mubr.f32.mxu0 %v108_v61 }
  0x7d   :  { %273 = vmatmul.mubr.f32.gmra.mxu0 %v107_v62 }
  0x7e   :  { %277 = vmatprep.mubr.f32.mxu0 %v110_v63 }
  0x81   :  { %278 = vmatmul.mubr.f32.gmra.mxu0 %v109_v0  ;;  %v576_v0 = vld [vmem:[#allocation9 + $0x38] sm:$0xff] }
  0x82   :  { %282 = vmatprep.mubr.f32.mxu0 %v112_v1 }
  0x85   :  { %283 = vmatmul.mubr.f32.gmra.mxu0 %v111_v2 }
  0x86   :  { %287 = vmatprep.mubr.f32.mxu0 %v114_v3 }
  0x89   :  { %288 = vmatmul.mubr.f32.gmra.mxu0 %v113_v4  ;;  %v575_v4 = vld [vmem:[#allocation9 + $0x30] sm:$0xff] }
  0x8a   :  { %292 = vmatprep.mubr.f32.mxu0 %v116_v5 }
  0x8d   :  { %293 = vmatmul.mubr.f32.gmra.mxu0 %v115_v6 }
  0x8e   :  { %297 = vmatprep.mubr.f32.mxu0 %v118_v7 }
  0x91   :  { %298 = vmatmul.mubr.f32.gmra.mxu0 %v117_v8  ;;  %v574_v8 = vld [vmem:[#allocation9 + $0x28] sm:$0xff] }
 0x115   :  { %v806_v17 = vpop.f32.mrf.mxu0 }
 0x117   :  { %v807_v19 = vpop.f32.mrf.mxu0 }
 0x118   :  { %v808_v20 = vadd.f32 %v807_v19, %v806_v17 }
 0x119   :  { %v809_v21 = vpop.f32.mrf.mxu0 }
 0x11a   :  { %v225_v23 = vadd.f32 %v808_v20, %v1225_v18 }
 0x11b   :  { %v810_v24 = vpop.f32.mrf.mxu0 }
 0x11c   :  { %v811_v25 = vadd.f32 %v810_v24, %v809_v21  ;;  %vm303_vm0 = vcmp.ge.f32.partialorder %v225_v23, 0.0  ;;  %v320_v26 = vmul.f32 %v1230_v22, %v225_v23 }
 0x11d   :  { %v812_v27 = vpop.f32.mrf.mxu0 }
 0x11e   :  { %v230_v28 = vadd.f32 %v811_v25, %v1225_v18  ;;  %v336_v29 = vsel %vm303_vm0, %v225_v23, %v320_v26 }
 0x11f   :  { %v813_v30 = vpop.f32.mrf.mxu0  ;;  %950 = vmatprep.mubr.f32.mxu1 %v336_v29 }
 0x120   :  { %v814_v31 = vadd.f32 %v813_v30, %v812_v27  ;;  %vm304_vm1 = vcmp.ge.f32.partialorder %v230_v28, 0.0  ;;  %v321_v32 = vmul.f32 %v1230_v22, %v230_v28 }
 0x121   :  { %v815_v33 = vpop.f32.mrf.mxu0 }
 0x122   :  { %v235_v34 = vadd.f32 %v814_v31, %v1225_v18  ;;  %v337_v35 = vsel %vm304_vm1, %v230_v28, %v321_v32 }
 0x123   :  { %v816_v37 = vpop.f32.mrf.mxu0  ;;  %951 = vmatmul.mubr.f32.vlgmr.msra.gmra.mxu1 %v337_v35 }
 0x124   :  { %v817_v38 = vadd.f32 %v816_v37, %v815_v33  ;;  %vm305_vm2 = vcmp.ge.f32.partialorder %v235_v34, 0.0  ;;  %v322_v39 = vmul.f32 %v1230_v22, %v235_v34  ;;  %975 = vmatpush3.msra.mxu1 %v584_v16 }
 0x125   :  { %v818_v41 = vpop.f32.mrf.mxu0  ;;  %976 = vmatprep.subr.mxu1 %v583_v36 }
 0x126   :  { %v240_v42 = vadd.f32 %v817_v38, %v1225_v18  ;;  %v338_v43 = vsel %vm305_vm2, %v235_v34, %v322_v39  ;;  %977 = vmatpush3.msra.mxu1 %v583_v36 }
 0x127   :  { %v819_v45 = vpop.f32.mrf.mxu0  ;;  %953 = vmatprep.mubr.f32.mxu1 %v338_v43  ;;  %978 = vmatprep.subr.mxu1 %v582_v40 }
 0x128   :  { %v820_v46 = vadd.f32 %v819_v45, %v818_v41  ;;  %vm306_vm3 = vcmp.ge.f32.partialorder %v240_v42, 0.0  ;;  %v323_v47 = vmul.f32 %v1230_v22, %v240_v42  ;;  %979 = vmatpush3.msra.mxu1 %v582_v40 }
 0x129   :  { %v821_v49 = vpop.f32.mrf.mxu0  ;;  %980 = vmatprep.subr.mxu1 %v581_v44 }
 0x12a   :  { %v245_v50 = vadd.f32 %v820_v46, %v1225_v18  ;;  %v339_v51 = vsel %vm306_vm3, %v240_v42, %v323_v47  ;;  %981 = vmatpush3.msra.mxu1 %v581_v44 }
 0x12b   :  { %v822_v53 = vpop.f32.mrf.mxu0  ;;  %954 = vmatmul.mubr.f32.gmra.mxu1 %v339_v51  ;;  %982 = vmatprep.subr.mxu1 %v580_v48 }
 0x12c   :  { %v823_v54 = vadd.f32 %v822_v53, %v821_v49  ;;  %vm307_vm4 = vcmp.ge.f32.partialorder %v245_v50, 0.0  ;;  %v324_v55 = vmul.f32 %v1230_v22, %v245_v50  ;;  %983 = vmatpush3.msra.mxu1 %v580_v48 }
 0x12d   :  { %v824_v57 = vpop.f32.mrf.mxu0  ;;  %984 = vmatprep.subr.mxu1 %v579_v52 }
 0x12e   :  { %v250_v58 = vadd.f32 %v823_v54, %v1225_v18  ;;  %v340_v59 = vsel %vm307_vm4, %v245_v50, %v324_v55  ;;  %985 = vmatpush3.msra.mxu1 %v579_v52 }
 0x12f   :  { %v825_v61 = vpop.f32.mrf.mxu0  ;;  %956 = vmatprep.mubr.f32.mxu1 %v340_v59  ;;  %986 = vmatprep.subr.mxu1 %v578_v56 }
 0x130   :  { %v826_v62 = vadd.f32 %v825_v61, %v824_v57  ;;  %vm308_vm5 = vcmp.ge.f32.partialorder %v250_v58, 0.0  ;;  %v325_v63 = vmul.f32 %v1230_v22, %v250_v58  ;;  %987 = vmatpush3.msra.mxu1 %v578_v56 }
 0x131   :  { %v827_v1 = vpop.f32.mrf.mxu0  ;;  %988 = vmatprep.subr.mxu1 %v577_v60 }
 0x132   :  { %v255_v2 = vadd.f32 %v826_v62, %v1225_v18  ;;  %v341_v3 = vsel %vm308_vm5, %v250_v58, %v325_v63  ;;  %989 = vmatpush3.msra.mxu1 %v577_v60 }
 0x133   :  { %v828_v5 = vpop.f32.mrf.mxu0  ;;  %957 = vmatmul.mubr.f32.gmra.mxu1 %v341_v3  ;;  %990 = vmatprep.subr.mxu1 %v576_v0  ;;  %v569_v3 = vld [vmem:[#allocation9] sm:$0xff] }
 0x134   :  { %v829_v6 = vadd.f32 %v828_v5, %v827_v1  ;;  %vm309_vm6 = vcmp.ge.f32.partialorder %v255_v2, 0.0  ;;  %v326_v7 = vmul.f32 %v1230_v22, %v255_v2  ;;  %991 = vmatpush3.msra.mxu1 %v576_v0  ;;  %v572_v0 = vld [vmem:[#allocation9 + $0x18] sm:$0xff]  ;;  %v571_v1 = vld [vmem:[#allocation9 + $0x10] sm:$0xff] }
 0x135   :  { %v830_v9 = vpop.f32.mrf.mxu0  ;;  %992 = vmatprep.subr.mxu1 %v575_v4 }
 0x136   :  { %v260_v10 = vadd.f32 %v829_v6, %v1225_v18  ;;  %v342_v11 = vsel %vm309_vm6, %v255_v2, %v326_v7  ;;  %993 = vmatpush3.msra.mxu1 %v575_v4  ;;  %v570_v2 = vld [vmem:[#allocation9 + $0x8] sm:$0xff] }
 0x137   :  { %v831_v13 = vpop.f32.mrf.mxu0  ;;  %959 = vmatprep.mubr.f32.mxu1 %v342_v11  ;;  %994 = vmatprep.subr.mxu1 %v574_v8 }
 0x138   :  { %v832_v14 = vadd.f32 %v831_v13, %v830_v9  ;;  %vm310_vm7 = vcmp.ge.f32.partialorder %v260_v10, 0.0  ;;  %v327_v15 = vmul.f32 %v1230_v22, %v260_v10  ;;  %995 = vmatpush3.msra.mxu1 %v574_v8 }
 0x139   :  { %v833_v16 = vpop.f32.mrf.mxu0  ;;  %996 = vmatprep.subr.mxu1 %v573_v12 }
 0x13a   :  { %v265_v17 = vadd.f32 %v832_v14, %v1225_v18  ;;  %v343_v19 = vsel %vm310_vm7, %v260_v10, %v327_v15  ;;  %997 = vmatpush3.msra.mxu1 %v573_v12 }
 0x13b   :  { %v834_v20 = vpop.f32.mrf.mxu0  ;;  %960 = vmatmul.mubr.f32.gmra.mxu1 %v343_v19  ;;  %998 = vmatprep.subr.mxu1 %v572_v0 }
 0x13c   :  { %v835_v21 = vadd.f32 %v834_v20, %v833_v16  ;;  %vm311_vm8 = vcmp.ge.f32.partialorder %v265_v17, 0.0  ;;  %v328_v23 = vmul.f32 %v1230_v22, %v265_v17  ;;  %999 = vmatpush3.msra.mxu1 %v572_v0 }
 0x13d   :  { %v836_v24 = vpop.f32.mrf.mxu0  ;;  %1000 = vmatprep.subr.mxu1 %v571_v1 }
 0x13e   :  { %v270_v25 = vadd.f32 %v835_v21, %v1225_v18  ;;  %v344_v26 = vsel %vm311_vm8, %v265_v17, %v328_v23  ;;  %1001 = vmatpush3.msra.mxu1 %v571_v1 }
 0x13f   :  { %v837_v27 = vpop.f32.mrf.mxu0  ;;  %962 = vmatprep.mubr.f32.mxu1 %v344_v26  ;;  %1002 = vmatprep.subr.mxu1 %v570_v2 }
 0x140   :  { %v838_v28 = vadd.f32 %v837_v27, %v836_v24  ;;  %vm312_vm9 = vcmp.ge.f32.partialorder %v270_v25, 0.0  ;;  %v329_v29 = vmul.f32 %v1230_v22, %v270_v25  ;;  %1003 = vmatpush3.msra.mxu1 %v570_v2 }
 0x141   :  { %v839_v30 = vpop.f32.mrf.mxu0  ;;  %1004 = vmatprep.subr.mxu1 %v569_v3 }
 0x142   :  { %v275_v31 = vadd.f32 %v838_v28, %v1225_v18  ;;  %v345_v32 = vsel %vm312_vm9, %v270_v25, %v329_v29  ;;  %1005 = vmatpush3.msra.mxu1 %v569_v3 }
 0x143   :  { %v840_v33 = vpop.f32.mrf.mxu0  ;;  %963 = vmatmul.mubr.f32.gmra.mxu1 %v345_v32 }
 0x144   :  { %v841_v34 = vadd.f32 %v840_v33, %v839_v30  ;;  %vm313_vm10 = vcmp.ge.f32.partialorder %v275_v31, 0.0  ;;  %v330_v35 = vmul.f32 %v1230_v22, %v275_v31 }
 0x145   :  { %v842_v36 = vpop.f32.mrf.mxu0 }
 0x146   :  { %v280_v37 = vadd.f32 %v841_v34, %v1225_v18  ;;  %v346_v38 = vsel %vm313_vm10, %v275_v31, %v330_v35 }
 0x147   :  { %v843_v39 = vpop.f32.mrf.mxu0  ;;  %965 = vmatprep.mubr.f32.mxu1 %v346_v38 }
 0x148   :  { %v844_v40 = vadd.f32 %v843_v39, %v842_v36  ;;  %vm314_vm11 = vcmp.ge.f32.partialorder %v280_v37, 0.0  ;;  %v331_v41 = vmul.f32 %v1230_v22, %v280_v37 }
 0x149   :  { %v845_v42 = vpop.f32.mrf.mxu0 }
 0x14a   :  { %v285_v43 = vadd.f32 %v844_v40, %v1225_v18  ;;  %v347_v44 = vsel %vm314_vm11, %v280_v37, %v331_v41 }
 0x14b   :  { %v846_v45 = vpop.f32.mrf.mxu0  ;;  %966 = vmatmul.mubr.f32.gmra.mxu1 %v347_v44 }
 0x14c   :  { %v847_v46 = vadd.f32 %v846_v45, %v845_v42  ;;  %vm315_vm12 = vcmp.ge.f32.partialorder %v285_v43, 0.0  ;;  %v332_v47 = vmul.f32 %v1230_v22, %v285_v43 }
 0x14d   :  { %v848_v48 = vpop.f32.mrf.mxu0 }
 0x14e   :  { %v290_v49 = vadd.f32 %v847_v46, %v1225_v18  ;;  %v348_v50 = vsel %vm315_vm12, %v285_v43, %v332_v47 }
 0x14f   :  { %v849_v51 = vpop.f32.mrf.mxu0  ;;  %968 = vmatprep.mubr.f32.mxu1 %v348_v50 }
 0x150   :  { %v850_v52 = vadd.f32 %v849_v51, %v848_v48  ;;  %vm316_vm13 = vcmp.ge.f32.partialorder %v290_v49, 0.0  ;;  %v333_v53 = vmul.f32 %v1230_v22, %v290_v49 }
 0x151   :  { %v851_v54 = vpop.f32.mrf.mxu0 }
 0x152   :  { %v295_v55 = vadd.f32 %v850_v52, %v1225_v18  ;;  %v349_v56 = vsel %vm316_vm13, %v290_v49, %v333_v53 }
 0x153   :  { %v852_v57 = vpop.f32.mrf.mxu0  ;;  %969 = vmatmul.mubr.f32.gmra.mxu1 %v349_v56 }
 0x154   :  { %v853_v58 = vadd.f32 %v852_v57, %v851_v54  ;;  %vm317_vm14 = vcmp.ge.f32.partialorder %v295_v55, 0.0  ;;  %v334_v59 = vmul.f32 %v1230_v22, %v295_v55 }
 0x156   :  { %v300_v60 = vadd.f32 %v853_v58, %v1225_v18  ;;  %v350_v61 = vsel %vm317_vm14, %v295_v55, %v334_v59  ;;  %v1267_v18 = vld [vmem:[%s1314_s4] ss:$0 sm:$0xff] }
 0x157   :  { %971 = vmatprep.mubr.f32.mxu1 %v350_v61 }
 0x158   :  { %vm318_vm15 = vcmp.ge.f32.partialorder %v300_v60, 0.0  ;;  %v335_v62 = vmul.f32 %v1230_v22, %v300_v60 }
 0x15a   :  { %v351_v63 = vsel %vm318_vm15, %v300_v60, %v335_v62 }
 0x15b   :  { %972 = vmatmul.mubr.f32.gmra.mxu1 %v351_v63 }
 0x1e3   :  { %v952_v4 = vpop.f32.mrf.mxu1 }
 0x1e4   :  { %v447_v5 = vadd.f32 %v952_v4, %v1267_v18 }
 0x1e5   :  { %v441_v6 = vpop.f32.mrf.mxu1 }
 0x1e6   :  { %v442_v7 = vadd.f32 %v1267_v18, %v441_v6  ;;  %v537_v8 = vmul.f32 %v447_v5, %v1230_v22  ;;  %vm521_vm0 = vcmp.ge.f32.partialorder %v447_v5, 0.0  ;;  %v773_v6 = vld [vmem:[%s1316_s6] ss:$0 sm:$0xff]  ;;  %s1155_s6 = smov [#allocation11]  }
 0x1e7   :  { %s757_s10 = sshll.u32 %s1155_s6, 4  ;;  %s758_s10 = int_to_ptr.vmem [resolvable:$true] %s757_s10 }
 0x1e8   :  { %v536_v9 = vmul.f32 %v442_v7, %v1230_v22  ;;  %vm520_vm1 = vcmp.ge.f32.partialorder %v442_v7, 0.0  ;;  %v553_v11 = vsel %vm521_vm0, %v447_v5, %v537_v8  ;;  %s1119_s11 = scalar_lea.vmem %s758_s10, 2048  ;;  %p1124_p7 = scmp.lt.s32.totalorder %s758_s10, %s758_s10 }
 0x1e9   :  { %p1120_p6 = scmp.ne.s32.totalorder %s758_s10, %s1119_s11  ;;  %p1125_p8 = scmp.lt.s32.totalorder %s1119_s11, %s1119_s11 }
 0x1ea   :  { %v552_v10 = vsel %vm520_vm1, %v442_v7, %v536_v9 }
 0x1eb   :  { %v955_v12 = vpop.f32.mrf.mxu1  ;;  %1006 = vmatprep.mubr.f32.mxu1 %v552_v10  ;;  %p1126_p9 = por %p1125_p8, %p1124_p7 }
 0x1ec   :  { %v457_v13 = vadd.f32 %v955_v12, %v1267_v18  ;;  %1007 = vmatmul.mubr.f32.vlgmr.msra.gmra.mxu1 %v553_v11 }
 0x1ed   :  { %v451_v14 = vpop.f32.mrf.mxu1  ;;  %p1127_p10 = pnand %p1126_p9, %p1120_p6 }
 0x1ee   :  { %v452_v15 = vadd.f32 %v1267_v18, %v451_v14  ;;  %v539_v16 = vmul.f32 %v457_v13, %v1230_v22  ;;  %vm523_vm3 = vcmp.ge.f32.partialorder %v457_v13, 0.0 }
 0x1f0   :  { %v538_v17 = vmul.f32 %v452_v15, %v1230_v22  ;;  %vm522_vm2 = vcmp.ge.f32.partialorder %v452_v15, 0.0  ;;  %v555_v21 = vsel %vm523_vm3, %v457_v13, %v539_v16 }
 0x1f2   :  { %v554_v19 = vsel %vm522_vm2, %v452_v15, %v538_v17 }
 0x1f3   :  { %v958_v20 = vpop.f32.mrf.mxu1  ;;  %1009 = vmatprep.mubr.f32.mxu1 %v554_v19 }
 0x1f4   :  { %v467_v23 = vadd.f32 %v958_v20, %v1267_v18  ;;  %1010 = vmatmul.mubr.f32.gmra.mxu1 %v555_v21 }
 0x1f5   :  { %v461_v24 = vpop.f32.mrf.mxu1 }
 0x1f6   :  { %v462_v25 = vadd.f32 %v1267_v18, %v461_v24  ;;  %v541_v26 = vmul.f32 %v467_v23, %v1230_v22  ;;  %vm525_vm5 = vcmp.ge.f32.partialorder %v467_v23, 0.0 }
 0x1f8   :  { %v540_v27 = vmul.f32 %v462_v25, %v1230_v22  ;;  %vm524_vm4 = vcmp.ge.f32.partialorder %v462_v25, 0.0  ;;  %v557_v30 = vsel %vm525_vm5, %v467_v23, %v541_v26 }
 0x1fa   :  { %v556_v28 = vsel %vm524_vm4, %v462_v25, %v540_v27 }
 0x1fb   :  { %v961_v29 = vpop.f32.mrf.mxu1  ;;  %1012 = vmatprep.mubr.f32.mxu1 %v556_v28 }
 0x1fc   :  { %v477_v31 = vadd.f32 %v961_v29, %v1267_v18  ;;  %1013 = vmatmul.mubr.f32.gmra.mxu1 %v557_v30 }
 0x1fd   :  { %v471_v32 = vpop.f32.mrf.mxu1 }
 0x1fe   :  { %v472_v33 = vadd.f32 %v1267_v18, %v471_v32  ;;  %v543_v34 = vmul.f32 %v477_v31, %v1230_v22  ;;  %vm527_vm7 = vcmp.ge.f32.partialorder %v477_v31, 0.0 }
 0x200   :  { %v542_v35 = vmul.f32 %v472_v33, %v1230_v22  ;;  %vm526_vm6 = vcmp.ge.f32.partialorder %v472_v33, 0.0  ;;  %v559_v38 = vsel %vm527_vm7, %v477_v31, %v543_v34 }
 0x202   :  { %v558_v36 = vsel %vm526_vm6, %v472_v33, %v542_v35 }
 0x203   :  { %v964_v37 = vpop.f32.mrf.mxu1  ;;  %1015 = vmatprep.mubr.f32.mxu1 %v558_v36 }
 0x204   :  { %v487_v39 = vadd.f32 %v964_v37, %v1267_v18  ;;  %1016 = vmatmul.mubr.f32.gmra.mxu1 %v559_v38 }
 0x205   :  { %v481_v40 = vpop.f32.mrf.mxu1 }
 0x206   :  { %v482_v41 = vadd.f32 %v1267_v18, %v481_v40  ;;  %v545_v42 = vmul.f32 %v487_v39, %v1230_v22  ;;  %vm529_vm9 = vcmp.ge.f32.partialorder %v487_v39, 0.0 }
 0x208   :  { %v544_v43 = vmul.f32 %v482_v41, %v1230_v22  ;;  %vm528_vm8 = vcmp.ge.f32.partialorder %v482_v41, 0.0  ;;  %v561_v46 = vsel %vm529_vm9, %v487_v39, %v545_v42 }
 0x20a   :  { %v560_v44 = vsel %vm528_vm8, %v482_v41, %v544_v43 }
 0x20b   :  { %v967_v45 = vpop.f32.mrf.mxu1  ;;  %1018 = vmatprep.mubr.f32.mxu1 %v560_v44 }
 0x20c   :  { %v497_v47 = vadd.f32 %v967_v45, %v1267_v18  ;;  %1019 = vmatmul.mubr.f32.gmra.mxu1 %v561_v46 }
 0x20d   :  { %v491_v48 = vpop.f32.mrf.mxu1 }
 0x20e   :  { %v492_v49 = vadd.f32 %v1267_v18, %v491_v48  ;;  %v547_v50 = vmul.f32 %v497_v47, %v1230_v22  ;;  %vm531_vm11 = vcmp.ge.f32.partialorder %v497_v47, 0.0 }
 0x210   :  { %v546_v51 = vmul.f32 %v492_v49, %v1230_v22  ;;  %vm530_vm10 = vcmp.ge.f32.partialorder %v492_v49, 0.0  ;;  %v563_v54 = vsel %vm531_vm11, %v497_v47, %v547_v50 }
 0x212   :  { %v562_v52 = vsel %vm530_vm10, %v492_v49, %v546_v51 }
 0x213   :  { %v970_v53 = vpop.f32.mrf.mxu1  ;;  %1021 = vmatprep.mubr.f32.mxu1 %v562_v52 }
 0x214   :  { %v507_v55 = vadd.f32 %v970_v53, %v1267_v18  ;;  %1022 = vmatmul.mubr.f32.gmra.mxu1 %v563_v54 }
 0x215   :  { %v501_v56 = vpop.f32.mrf.mxu1 }
 0x216   :  { %v502_v57 = vadd.f32 %v1267_v18, %v501_v56  ;;  %v549_v58 = vmul.f32 %v507_v55, %v1230_v22  ;;  %vm533_vm13 = vcmp.ge.f32.partialorder %v507_v55, 0.0 }
 0x218   :  { %v548_v59 = vmul.f32 %v502_v57, %v1230_v22  ;;  %vm532_vm12 = vcmp.ge.f32.partialorder %v502_v57, 0.0  ;;  %v565_v62 = vsel %vm533_vm13, %v507_v55, %v549_v58 }
 0x21a   :  { %v564_v60 = vsel %vm532_vm12, %v502_v57, %v548_v59 }
 0x21b   :  { %v973_v61 = vpop.f32.mrf.mxu1  ;;  %1024 = vmatprep.mubr.f32.mxu1 %v564_v60 }
 0x21c   :  { %v517_v63 = vadd.f32 %v973_v61, %v1267_v18  ;;  %1025 = vmatmul.mubr.f32.gmra.mxu1 %v565_v62 }
 0x21d   :  { %v511_v0 = vpop.f32.mrf.mxu1 }
 0x21e   :  { %v512_v1 = vadd.f32 %v1267_v18, %v511_v0  ;;  %v551_v2 = vmul.f32 %v517_v63, %v1230_v22  ;;  %vm535_vm15 = vcmp.ge.f32.partialorder %v517_v63, 0.0 }
 0x220   :  { %v550_v3 = vmul.f32 %v512_v1, %v1230_v22  ;;  %vm534_vm14 = vcmp.ge.f32.partialorder %v512_v1, 0.0  ;;  %v567_v5 = vsel %vm535_vm15, %v517_v63, %v551_v2 }
 0x222   :  { %v566_v4 = vsel %vm534_vm14, %v512_v1, %v550_v3 }
 0x223   :  { %1027 = vmatprep.mubr.f32.mxu1 %v566_v4 }
 0x224   :  { %1028 = vmatmul.mubr.f32.gmra.mxu1 %v567_v5 }
 0x2ac   :  { %v1008_v7 = vpop.f32.mrf.mxu1 }
 0x2ad   :  { %v663_v8 = vadd.f32 %v1008_v7, %v773_v6 }
 0x2ae   :  { %v657_v9 = vpop.f32.mrf.mxu1 }
 0x2af   :  { %737 = vst [vmem:[#allocation11 + $0x8] sm:$0xff] %v663_v8  ;;  %v658_v10 = vadd.f32 %v773_v6, %v657_v9 }
 0x2b1   :  { %736 = vst [vmem:[#allocation11] sm:$0xff] %v658_v10 }
 0x2b4   :  { %v1011_v18 = vpop.f32.mrf.mxu1 }
 0x2b5   :  { %v673_v11 = vadd.f32 %v1011_v18, %v773_v6 }
 0x2b6   :  { %v667_v12 = vpop.f32.mrf.mxu1 }
 0x2b7   :  { %739 = vst [vmem:[#allocation11 + $0x18] sm:$0xff] %v673_v11  ;;  %v668_v22 = vadd.f32 %v773_v6, %v667_v12 }
 0x2b9   :  { %738 = vst [vmem:[#allocation11 + $0x10] sm:$0xff] %v668_v22 }
 0x2bc   :  { %v1014_v13 = vpop.f32.mrf.mxu1 }
 0x2bd   :  { %v683_v14 = vadd.f32 %v1014_v13, %v773_v6 }
 0x2be   :  { %v677_v15 = vpop.f32.mrf.mxu1 }
 0x2bf   :  { %741 = vst [vmem:[#allocation11 + $0x28] sm:$0xff] %v683_v14  ;;  %v678_v16 = vadd.f32 %v773_v6, %v677_v15 }
 0x2c1   :  { %740 = vst [vmem:[#allocation11 + $0x20] sm:$0xff] %v678_v16 }
 0x2c4   :  { %v1017_v17 = vpop.f32.mrf.mxu1 }
 0x2c5   :  { %v693_v19 = vadd.f32 %v1017_v17, %v773_v6 }
 0x2c6   :  { %v687_v20 = vpop.f32.mrf.mxu1 }
 0x2c7   :  { %743 = vst [vmem:[#allocation11 + $0x38] sm:$0xff] %v693_v19  ;;  %v688_v21 = vadd.f32 %v773_v6, %v687_v20 }
 0x2c9   :  { %742 = vst [vmem:[#allocation11 + $0x30] sm:$0xff] %v688_v21 }
 0x2cc   :  { %v1020_v23 = vpop.f32.mrf.mxu1 }
 0x2cd   :  { %v703_v24 = vadd.f32 %v1020_v23, %v773_v6 }
 0x2ce   :  { %v697_v25 = vpop.f32.mrf.mxu1 }
 0x2cf   :  { %745 = vst [vmem:[#allocation11 + $0x48] sm:$0xff] %v703_v24  ;;  %v698_v26 = vadd.f32 %v773_v6, %v697_v25 }
 0x2d1   :  { %744 = vst [vmem:[#allocation11 + $0x40] sm:$0xff] %v698_v26 }
 0x2d4   :  { %v1023_v27 = vpop.f32.mrf.mxu1 }
 0x2d5   :  { %v713_v28 = vadd.f32 %v1023_v27, %v773_v6 }
 0x2d6   :  { %v707_v29 = vpop.f32.mrf.mxu1 }
 0x2d7   :  { %747 = vst [vmem:[#allocation11 + $0x58] sm:$0xff] %v713_v28  ;;  %v708_v30 = vadd.f32 %v773_v6, %v707_v29 }
 0x2d9   :  { %746 = vst [vmem:[#allocation11 + $0x50] sm:$0xff] %v708_v30 }
 0x2dc   :  { %v1026_v31 = vpop.f32.mrf.mxu1 }
 0x2dd   :  { %v723_v32 = vadd.f32 %v1026_v31, %v773_v6 }
 0x2de   :  { %v717_v33 = vpop.f32.mrf.mxu1 }
 0x2df   :  { %749 = vst [vmem:[#allocation11 + $0x68] sm:$0xff] %v723_v32  ;;  %v718_v34 = vadd.f32 %v773_v6, %v717_v33 }
 0x2e1   :  { %748 = vst [vmem:[#allocation11 + $0x60] sm:$0xff] %v718_v34 }
 0x2e4   :  { %v1029_v35 = vpop.f32.mrf.mxu1 }
 0x2e5   :  { %v733_v36 = vadd.f32 %v1029_v35, %v773_v6 }
 0x2e6   :  { %v727_v37 = vpop.f32.mrf.mxu1 }
 0x2e7   :  { %751 = vst [vmem:[#allocation11 + $0x78] sm:$0xff] %v733_v36  ;;  %v728_v38 = vadd.f32 %v773_v6, %v727_v37 }
 0x2e9   :  { %750 = vst [vmem:[#allocation11 + $0x70] sm:$0xff] %v728_v38 }
 0x2ea   :  { %1130 = shalt.err (!%p1127_p10)
}
 0x2eb   :  { %763 = dma.vmem_to_hbm [thread:$0]  %s758_s10, 2048, %s1318_s8, [#allocation5], %s1148_s30, %s1148_s30, %s1149_s9  }
 0x2ec   :  { %1145 = dma.done.wait [#allocation5], 2048  }
 0x2ed   :  { %1146 = vsyncadd [#allocation5], 4294965248 }
 0x2ee   :  { %767 = vsyncpa [#allocation4], 1 }
 0x2ef   :  { %768 = vsyncpa [#allocation7], 1 }
 0x2f0   :  { %769 = vsyncpa [#allocation10], 1 }
 0x2f1   :  { %770 = vsyncpa [#allocation5], 1 }

// kernel: tpu_custom_call.1
= control target key start
LH: loop header
LB: loop body
LE: loop exit
PB: predicated region body
PF: predicated region fallthrough
CT: control target
= control target key end

     0   :  { %14 = vsyncpa [#allocation4], 0  ;;  %s1310_s0 = inlined_call_operand.hbm [shape: f32[128,256], index: 0, kind: input, shape index: {}]   ;;  %s1311_s1 = inlined_call_operand.hbm [shape: f32[256,128], index: 1, kind: input, shape index: {}]   ;;  %s1312_s2 = inlined_call_operand.vmem [shape: f32[1,128], index: 2, kind: input, shape index: {}]   ;;  %s1313_s3 = inlined_call_operand.hbm [shape: f32[128,128], index: 3, kind: input, shape index: {}]   ;;  %s1314_s4 = inlined_call_operand.vmem [shape: f32[1,128], index: 4, kind: input, shape index: {}]   ;;  %s1315_s5 = inlined_call_operand.hbm [shape: f32[128,128], index: 5, kind: input, shape index: {}]   ;;  %s1316_s6 = inlined_call_operand.vmem [shape: f32[1,128], index: 6, kind: input, shape index: {}]   ;;  %s1317_s7 = inlined_call_operand.<no memory space> [shape: f32[1], index: 7, kind: input, shape index: {}]   ;;  %s1318_s8 = inlined_call_operand.hbm [shape: f32[128,128], index: 8, kind: output, shape index: {}]  }
   0x1   :  { %15 = vsyncpa [#allocation7], 0 }
   0x2   :  { %16 = vsyncpa [#allocation10], 0 }
   0x3   :  { %17 = vsyncpa [#allocation5], 0  ;;  %s1147_s27 = smov [#allocation6]  }
   0x4   :  { %s35_s28 = sshll.u32 %s1147_s27, 4  ;;  %s36_s28 = int_to_ptr.vmem [resolvable:$true] %s35_s28 }
   0x5   :  { %s1047_s29 = scalar_lea.vmem %s36_s28, 4096  ;;  %p1052_p1 = scmp.lt.s32.totalorder %s36_s28, %s36_s28 }
   0x6   :  { %p1048_p0 = scmp.ne.s32.totalorder %s36_s28, %s1047_s29  ;;  %p1053_p2 = scmp.lt.s32.totalorder %s1047_s29, %s1047_s29 }
   0x8   :  { %p1054_p3 = por %p1053_p2, %p1052_p1 }
   0xa   :  { %p1055_p4 = pnand %p1054_p3, %p1048_p0 }
   0xc   :  { %1058 = shalt.err (!%p1055_p4)
}
   0xd   :  { %s1148_s30 = smov 128   ;;  %s1149_s9 = smov 8  }
   0xe   :  { %41 = dma.hbm_to_vmem [thread:$0]  %s1311_s1, 4096, %s36_s28, [#allocation7], %s1148_s30, %s1148_s30, %s1149_s9  }
   0xf   :  { %s1150_s12 = smov [#allocation3]  }
  0x10   :  { %s23_s13 = sshll.u32 %s1150_s12, 4  ;;  %s24_s13 = int_to_ptr.vmem [resolvable:$true] %s23_s13 }
  0x11   :  { %s1067_s14 = scalar_lea.vmem %s24_s13, 4096  ;;  %p1072_p6 = scmp.lt.s32.totalorder %s24_s13, %s24_s13 }
  0x12   :  { %p1068_p5 = scmp.ne.s32.totalorder %s24_s13, %s1067_s14  ;;  %p1073_p7 = scmp.lt.s32.totalorder %s1067_s14, %s1067_s14 }
  0x14   :  { %p1074_p8 = por %p1073_p7, %p1072_p6 }
  0x16   :  { %p1075_p9 = pnand %p1074_p8, %p1068_p5 }
  0x18   :  { %1078 = shalt.err (!%p1075_p9)
}
  0x19   :  { %s1151_s15 = smov 256   ;;  %s1152_s16 = smov 16  }
  0x1a   :  { %29 = dma.hbm_to_vmem [thread:$0]  %s1310_s0, 4096, %s24_s13, [#allocation4], %s1151_s15, %s1151_s15, %s1152_s16  }
  0x1b   :  { %s1153_s19 = smov [#allocation8]   ;;  %s1154_s21 = smov [#allocation9]  }
  0x1c   :  { %s49_s20 = sshll.u32 %s1153_s19, 4  ;;  %s63_s1 = sshll.u32 %s1154_s21, 4  ;;  %s50_s20 = int_to_ptr.vmem [resolvable:$true] %s49_s20  ;;  %s64_s1 = int_to_ptr.vmem [resolvable:$true] %s63_s1 }
  0x1d   :  { %s1087_s22 = scalar_lea.vmem %s50_s20, 2048  ;;  %p1092_p11 = scmp.lt.s32.totalorder %s50_s20, %s50_s20 }
  0x1e   :  { %p1088_p10 = scmp.ne.s32.totalorder %s50_s20, %s1087_s22  ;;  %p1093_p12 = scmp.lt.s32.totalorder %s1087_s22, %s1087_s22 }
  0x20   :  { %p1094_p13 = por %p1093_p12, %p1092_p11 }
  0x22   :  { %p1095_p0 = pnand %p1094_p13, %p1088_p10 }
  0x24   :  { %1098 = shalt.err (!%p1095_p0)
}
  0x25   :  { %55 = dma.hbm_to_vmem [thread:$0]  %s1313_s3, 2048, %s50_s20, [#allocation7], %s1148_s30, %s1148_s30, %s1149_s9  }
  0x26   :  { %s1107_s0 = scalar_lea.vmem %s64_s1, 2048  ;;  %p1112_p2 = scmp.lt.s32.totalorder %s64_s1, %s64_s1 }
  0x27   :  { %p1108_p1 = scmp.ne.s32.totalorder %s64_s1, %s1107_s0  ;;  %p1113_p3 = scmp.lt.s32.totalorder %s1107_s0, %s1107_s0 }
  0x29   :  { %p1114_p4 = por %p1113_p3, %p1112_p2 }
  0x2b   :  { %p1115_p5 = pnand %p1114_p4, %p1108_p1 }
  0x2d   :  { %1118 = shalt.err (!%p1115_p5)
}
  0x2e   :  { %69 = dma.hbm_to_vmem [thread:$0]  %s1315_s5, 2048, %s64_s1, [#allocation10], %s1148_s30, %s1148_s30, %s1149_s9  }
  0x2f   :  { %1139 = dma.done.wait [#allocation4], 4096  }
  0x30   :  { %1140 = vsyncadd [#allocation4], 4294963200 }
  0x31   :  { %1141 = dma.done.wait [#allocation7], 6144  }
  0x32   :  { %1142 = vsyncadd [#allocation7], 4294961152 }
  0x33   :  { %1143 = dma.done.wait [#allocation10], 2048  }
  0x34   :  { %1144 = vsyncadd [#allocation10], 4294965248  ;;  %v151_v0 = vld [vmem:[#allocation6 + $0xf8] sm:$0xff]  ;;  %v150_v2 = vld [vmem:[#allocation6 + $0xf0] sm:$0xff] }
  0x35   :  { %v135_v1 = vld [vmem:[#allocation6 + $0x78] sm:$0xff]  ;;  %774 = vmatprep.subr.mxu0 %v151_v0  ;;  %v134_v3 = vld [vmem:[#allocation6 + $0x70] sm:$0xff]  ;;  %v149_v4 = vld [vmem:[#allocation6 + $0xe8] sm:$0xff] }
  0x36   :  { %775 = vmatpush3.msra.mxu0 %v135_v1  ;;  %v133_v5 = vld [vmem:[#allocation6 + $0x68] sm:$0xff]  ;;  %v148_v6 = vld [vmem:[#allocation6 + $0xe0] sm:$0xff]  ;;  %v147_v8 = vld [vmem:[#allocation6 + $0xd8] sm:$0xff] }
  0x37   :  { %776 = vmatprep.subr.mxu0 %v150_v2  ;;  %v132_v7 = vld [vmem:[#allocation6 + $0x60] sm:$0xff]  ;;  %v131_v9 = vld [vmem:[#allocation6 + $0x58] sm:$0xff]  ;;  %v146_v10 = vld [vmem:[#allocation6 + $0xd0] sm:$0xff] }
  0x38   :  { %777 = vmatpush3.msra.mxu0 %v134_v3  ;;  %v130_v11 = vld [vmem:[#allocation6 + $0x50] sm:$0xff]  ;;  %v145_v12 = vld [vmem:[#allocation6 + $0xc8] sm:$0xff]  ;;  %v144_v15 = vld [vmem:[#allocation6 + $0xc0] sm:$0xff] }
  0x39   :  { %778 = vmatprep.subr.mxu0 %v149_v4  ;;  %v88_v13 = vld [vmem:[#allocation3 + $0x8] sm:$0xff]  ;;  %v128_v16 = vld [vmem:[#allocation6 + $0x40] sm:$0xff]  ;;  %v143_v17 = vld [vmem:[#allocation6 + $0xb8] sm:$0xff] }
  0x3a   :  { %779 = vmatpush3.msra.mxu0 %v133_v5  ;;  %v129_v14 = vld [vmem:[#allocation6 + $0x48] sm:$0xff]  ;;  %222 = vmatprep.mubr.f32.mxu0 %v88_v13  ;;  %v127_v18 = vld [vmem:[#allocation6 + $0x38] sm:$0xff]  ;;  %v142_v19 = vld [vmem:[#allocation6 + $0xb0] sm:$0xff] }
  0x3b   :  { %780 = vmatprep.subr.mxu0 %v148_v6  ;;  %v126_v20 = vld [vmem:[#allocation6 + $0x30] sm:$0xff]  ;;  %v141_v21 = vld [vmem:[#allocation6 + $0xa8] sm:$0xff]  ;;  %v140_v23 = vld [vmem:[#allocation6 + $0xa0] sm:$0xff] }
  0x3c   :  { %781 = vmatpush3.msra.mxu0 %v132_v7  ;;  %v125_v22 = vld [vmem:[#allocation6 + $0x28] sm:$0xff]  ;;  %v124_v24 = vld [vmem:[#allocation6 + $0x20] sm:$0xff]  ;;  %v368_v25 = vld [vmem:[#allocation8 + $0x78] sm:$0xff] }
  0x3d   :  { %782 = vmatprep.subr.mxu0 %v147_v8  ;;  %v367_v26 = vld [vmem:[#allocation8 + $0x70] sm:$0xff]  ;;  %v139_v27 = vld [vmem:[#allocation6 + $0x98] sm:$0xff]  ;;  %918 = vmatprep.subr.mxu1 %v368_v25  ;;  %v366_v29 = vld [vmem:[#allocation8 + $0x68] sm:$0xff] }
  0x3e   :  { %783 = vmatpush3.msra.mxu0 %v131_v9  ;;  %v123_v28 = vld [vmem:[#allocation6 + $0x18] sm:$0xff]  ;;  %919 = vmatpush3.msra.mxu1 %v368_v25  ;;  %v138_v30 = vld [vmem:[#allocation6 + $0x90] sm:$0xff]  ;;  %v365_v32 = vld [vmem:[#allocation8 + $0x60] sm:$0xff] }
  0x3f   :  { %784 = vmatprep.subr.mxu0 %v146_v10  ;;  %920 = vmatprep.subr.mxu1 %v367_v26  ;;  %v122_v31 = vld [vmem:[#allocation6 + $0x10] sm:$0xff]  ;;  %v137_v33 = vld [vmem:[#allocation6 + $0x88] sm:$0xff]  ;;  %v364_v35 = vld [vmem:[#allocation8 + $0x58] sm:$0xff] }
  0x40   :  { %785 = vmatpush3.msra.mxu0 %v130_v11  ;;  %921 = vmatpush3.msra.mxu1 %v367_v26  ;;  %v121_v34 = vld [vmem:[#allocation6 + $0x8] sm:$0xff]  ;;  %v136_v36 = vld [vmem:[#allocation6 + $0x80] sm:$0xff]  ;;  %v363_v38 = vld [vmem:[#allocation8 + $0x50] sm:$0xff] }
  0x41   :  { %786 = vmatprep.subr.mxu0 %v145_v12  ;;  %922 = vmatprep.subr.mxu1 %v366_v29  ;;  %v120_v37 = vld [vmem:[#allocation6] sm:$0xff]  ;;  %v90_v40 = vld [vmem:[#allocation3 + $0x18] sm:$0xff]  ;;  %v362_v41 = vld [vmem:[#allocation8 + $0x48] sm:$0xff] }
  0x42   :  { %787 = vmatpush3.msra.mxu0 %v129_v14  ;;  %923 = vmatpush3.msra.mxu1 %v366_v29  ;;  %v87_v39 = vld [vmem:[#allocation3] sm:$0xff]  ;;  %v89_v43 = vld [vmem:[#allocation3 + $0x10] sm:$0xff]  ;;  %v92_v44 = vld [vmem:[#allocation3 + $0x28] sm:$0xff] }
  0x43   :  { %788 = vmatprep.subr.mxu0 %v144_v15  ;;  %924 = vmatprep.subr.mxu1 %v365_v32  ;;  %v361_v42 = vld [vmem:[#allocation8 + $0x40] sm:$0xff]  ;;  %v360_v45 = vld [vmem:[#allocation8 + $0x38] sm:$0xff]  ;;  %v93_v48 = vld [vmem:[#allocation3 + $0x30] sm:$0xff] }
  0x44   :  { %789 = vmatpush3.msra.mxu0 %v128_v16  ;;  %925 = vmatpush3.msra.mxu1 %v365_v32  ;;  %v91_v46 = vld [vmem:[#allocation3 + $0x20] sm:$0xff]  ;;  %v94_v47 = vld [vmem:[#allocation3 + $0x38] sm:$0xff]  ;;  %v96_v49 = vld [vmem:[#allocation3 + $0x48] sm:$0xff] }
  0x45   :  { %790 = vmatprep.subr.mxu0 %v143_v17  ;;  %926 = vmatprep.subr.mxu1 %v364_v35  ;;  %v95_v50 = vld [vmem:[#allocation3 + $0x40] sm:$0xff]  ;;  %v98_v51 = vld [vmem:[#allocation3 + $0x58] sm:$0xff]  ;;  %v97_v52 = vld [vmem:[#allocation3 + $0x50] sm:$0xff] }
  0x46   :  { %791 = vmatpush3.msra.mxu0 %v127_v18  ;;  %927 = vmatpush3.msra.mxu1 %v364_v35  ;;  %v100_v53 = vld [vmem:[#allocation3 + $0x68] sm:$0xff]  ;;  %v99_v54 = vld [vmem:[#allocation3 + $0x60] sm:$0xff]  ;;  %v102_v55 = vld [vmem:[#allocation3 + $0x78] sm:$0xff] }
  0x47   :  { %792 = vmatprep.subr.mxu0 %v142_v19  ;;  %928 = vmatprep.subr.mxu1 %v363_v38  ;;  %v101_v56 = vld [vmem:[#allocation3 + $0x70] sm:$0xff]  ;;  %v104_v57 = vld [vmem:[#allocation3 + $0x88] sm:$0xff]  ;;  %v103_v58 = vld [vmem:[#allocation3 + $0x80] sm:$0xff] }
  0x48   :  { %793 = vmatpush3.msra.mxu0 %v126_v20  ;;  %929 = vmatpush3.msra.mxu1 %v363_v38  ;;  %v106_v59 = vld [vmem:[#allocation3 + $0x98] sm:$0xff]  ;;  %v105_v60 = vld [vmem:[#allocation3 + $0x90] sm:$0xff]  ;;  %v108_v61 = vld [vmem:[#allocation3 + $0xa8] sm:$0xff] }
  0x49   :  { %794 = vmatprep.subr.mxu0 %v141_v21  ;;  %930 = vmatprep.subr.mxu1 %v362_v41  ;;  %v107_v62 = vld [vmem:[#allocation3 + $0xa0] sm:$0xff]  ;;  %v110_v63 = vld [vmem:[#allocation3 + $0xb8] sm:$0xff]  ;;  %v109_v0 = vld [vmem:[#allocation3 + $0xb0] sm:$0xff] }
  0x4a   :  { %795 = vmatpush3.msra.mxu0 %v125_v22  ;;  %931 = vmatpush3.msra.mxu1 %v362_v41  ;;  %v112_v1 = vld [vmem:[#allocation3 + $0xc8] sm:$0xff]  ;;  %v111_v2 = vld [vmem:[#allocation3 + $0xc0] sm:$0xff]  ;;  %v114_v3 = vld [vmem:[#allocation3 + $0xd8] sm:$0xff]  ;;  %v1230_v22 = vstv %s1317_s7 }
  0x4b   :  { %796 = vmatprep.subr.mxu0 %v140_v23  ;;  %932 = vmatprep.subr.mxu1 %v361_v42  ;;  %v113_v4 = vld [vmem:[#allocation3 + $0xd0] sm:$0xff]  ;;  %v116_v5 = vld [vmem:[#allocation3 + $0xe8] sm:$0xff]  ;;  %v115_v6 = vld [vmem:[#allocation3 + $0xe0] sm:$0xff] }
  0x4c   :  { %797 = vmatpush3.msra.mxu0 %v124_v24  ;;  %933 = vmatpush3.msra.mxu1 %v361_v42  ;;  %v118_v7 = vld [vmem:[#allocation3 + $0xf8] sm:$0xff]  ;;  %v117_v8 = vld [vmem:[#allocation3 + $0xf0] sm:$0xff]  ;;  %v358_v10 = vld [vmem:[#allocation8 + $0x28] sm:$0xff] }
  0x4d   :  { %798 = vmatprep.subr.mxu0 %v139_v27  ;;  %934 = vmatprep.subr.mxu1 %v360_v45  ;;  %v359_v9 = vld [vmem:[#allocation8 + $0x30] sm:$0xff]  ;;  %v357_v11 = vld [vmem:[#allocation8 + $0x20] sm:$0xff]  ;;  %v356_v12 = vld [vmem:[#allocation8 + $0x18] sm:$0xff] }
  0x4e   :  { %799 = vmatpush3.msra.mxu0 %v123_v28  ;;  %935 = vmatpush3.msra.mxu1 %v360_v45  ;;  %v355_v13 = vld [vmem:[#allocation8 + $0x10] sm:$0xff]  ;;  %v354_v14 = vld [vmem:[#allocation8 + $0x8] sm:$0xff]  ;;  %v353_v15 = vld [vmem:[#allocation8] sm:$0xff] }
  0x4f   :  { %800 = vmatprep.subr.mxu0 %v138_v30  ;;  %936 = vmatprep.subr.mxu1 %v359_v9  ;;  %v584_v16 = vld [vmem:[#allocation9 + $0x78] sm:$0xff]  ;;  %v1225_v18 = vld [vmem:[%s1312_s2] ss:$0 sm:$0xff] }
  0x50   :  { %801 = vmatpush3.msra.mxu0 %v122_v31  ;;  %937 = vmatpush3.msra.mxu1 %v359_v9 }
  0x51   :  { %802 = vmatprep.subr.mxu0 %v137_v33  ;;  %938 = vmatprep.subr.mxu1 %v358_v10 }
  0x52   :  { %803 = vmatpush3.msra.mxu0 %v121_v34  ;;  %939 = vmatpush3.msra.mxu1 %v358_v10 }
  0x53   :  { %804 = vmatprep.subr.mxu0 %v136_v36  ;;  %940 = vmatprep.subr.mxu1 %v357_v11  ;;  %v583_v36 = vld [vmem:[#allocation9 + $0x70] sm:$0xff] }
  0x54   :  { %805 = vmatpush3.msra.mxu0 %v120_v37  ;;  %941 = vmatpush3.msra.mxu1 %v357_v11 }
  0x55   :  { %223 = vmatmul.mubr.f32.vlgmr.msra.gmra.mxu0 %v87_v39  ;;  %942 = vmatprep.subr.mxu1 %v356_v12 }
  0x56   :  { %227 = vmatprep.mubr.f32.mxu0 %v90_v40  ;;  %943 = vmatpush3.msra.mxu1 %v356_v12  ;;  %v582_v40 = vld [vmem:[#allocation9 + $0x68] sm:$0xff]  ;;  %v573_v12 = vld [vmem:[#allocation9 + $0x20] sm:$0xff] }
  0x57   :  { %944 = vmatprep.subr.mxu1 %v355_v13 }
  0x58   :  { %945 = vmatpush3.msra.mxu1 %v355_v13 }
  0x59   :  { %228 = vmatmul.mubr.f32.gmra.mxu0 %v89_v43  ;;  %946 = vmatprep.subr.mxu1 %v354_v14 }
  0x5a   :  { %232 = vmatprep.mubr.f32.mxu0 %v92_v44  ;;  %947 = vmatpush3.msra.mxu1 %v354_v14  ;;  %v581_v44 = vld [vmem:[#allocation9 + $0x60] sm:$0xff] }
  0x5b   :  { %948 = vmatprep.subr.mxu1 %v353_v15 }
  0x5c   :  { %949 = vmatpush3.msra.mxu1 %v353_v15 }
  0x5d   :  { %233 = vmatmul.mubr.f32.gmra.mxu0 %v91_v46  ;;  %974 = vmatprep.subr.mxu1 %v584_v16 }
  0x5e   :  { %237 = vmatprep.mubr.f32.mxu0 %v94_v47 }
  0x61   :  { %238 = vmatmul.mubr.f32.gmra.mxu0 %v93_v48  ;;  %v580_v48 = vld [vmem:[#allocation9 + $0x58] sm:$0xff] }
  0x62   :  { %242 = vmatprep.mubr.f32.mxu0 %v96_v49 }
  0x65   :  { %243 = vmatmul.mubr.f32.gmra.mxu0 %v95_v50 }
  0x66   :  { %247 = vmatprep.mubr.f32.mxu0 %v98_v51 }
  0x69   :  { %248 = vmatmul.mubr.f32.gmra.mxu0 %v97_v52  ;;  %v579_v52 = vld [vmem:[#allocation9 + $0x50] sm:$0xff] }
  0x6a   :  { %252 = vmatprep.mubr.f32.mxu0 %v100_v53 }
  0x6d   :  { %253 = vmatmul.mubr.f32.gmra.mxu0 %v99_v54 }
  0x6e   :  { %257 = vmatprep.mubr.f32.mxu0 %v102_v55 }
  0x71   :  { %258 = vmatmul.mubr.f32.gmra.mxu0 %v101_v56  ;;  %v578_v56 = vld [vmem:[#allocation9 + $0x48] sm:$0xff] }
  0x72   :  { %262 = vmatprep.mubr.f32.mxu0 %v104_v57 }
  0x75   :  { %263 = vmatmul.mubr.f32.gmra.mxu0 %v103_v58 }
  0x76   :  { %267 = vmatprep.mubr.f32.mxu0 %v106_v59 }
  0x79   :  { %268 = vmatmul.mubr.f32.gmra.mxu0 %v105_v60  ;;  %v577_v60 = vld [vmem:[#allocation9 + $0x40] sm:$0xff] }
  0x7a   :  { %272 = vmatprep.mubr.f32.mxu0 %v108_v61 }
  0x7d   :  { %273 = vmatmul.mubr.f32.gmra.mxu0 %v107_v62 }
  0x7e   :  { %277 = vmatprep.mubr.f32.mxu0 %v110_v63 }
  0x81   :  { %278 = vmatmul.mubr.f32.gmra.mxu0 %v109_v0  ;;  %v576_v0 = vld [vmem:[#allocation9 + $0x38] sm:$0xff] }
  0x82   :  { %282 = vmatprep.mubr.f32.mxu0 %v112_v1 }
  0x85   :  { %283 = vmatmul.mubr.f32.gmra.mxu0 %v111_v2 }
  0x86   :  { %287 = vmatprep.mubr.f32.mxu0 %v114_v3 }
  0x89   :  { %288 = vmatmul.mubr.f32.gmra.mxu0 %v113_v4  ;;  %v575_v4 = vld [vmem:[#allocation9 + $0x30] sm:$0xff] }
  0x8a   :  { %292 = vmatprep.mubr.f32.mxu0 %v116_v5 }
  0x8d   :  { %293 = vmatmul.mubr.f32.gmra.mxu0 %v115_v6 }
  0x8e   :  { %297 = vmatprep.mubr.f32.mxu0 %v118_v7 }
  0x91   :  { %298 = vmatmul.mubr.f32.gmra.mxu0 %v117_v8  ;;  %v574_v8 = vld [vmem:[#allocation9 + $0x28] sm:$0xff] }
 0x115   :  { %v806_v17 = vpop.f32.mrf.mxu0 }
 0x117   :  { %v807_v19 = vpop.f32.mrf.mxu0 }
 0x118   :  { %v808_v20 = vadd.f32 %v807_v19, %v806_v17 }
 0x119   :  { %v809_v21 = vpop.f32.mrf.mxu0 }
 0x11a   :  { %v225_v23 = vadd.f32 %v808_v20, %v1225_v18 }
 0x11b   :  { %v810_v24 = vpop.f32.mrf.mxu0 }
 0x11c   :  { %v811_v25 = vadd.f32 %v810_v24, %v809_v21  ;;  %vm303_vm0 = vcmp.ge.f32.partialorder %v225_v23, 0.0  ;;  %v320_v26 = vmul.f32 %v1230_v22, %v225_v23 }
 0x11d   :  { %v812_v27 = vpop.f32.mrf.mxu0 }
 0x11e   :  { %v230_v28 = vadd.f32 %v811_v25, %v1225_v18  ;;  %v336_v29 = vsel %vm303_vm0, %v225_v23, %v320_v26 }
 0x11f   :  { %v813_v30 = vpop.f32.mrf.mxu0  ;;  %950 = vmatprep.mubr.f32.mxu1 %v336_v29 }
 0x120   :  { %v814_v31 = vadd.f32 %v813_v30, %v812_v27  ;;  %vm304_vm1 = vcmp.ge.f32.partialorder %v230_v28, 0.0  ;;  %v321_v32 = vmul.f32 %v1230_v22, %v230_v28 }
 0x121   :  { %v815_v33 = vpop.f32.mrf.mxu0 }
 0x122   :  { %v235_v34 = vadd.f32 %v814_v31, %v1225_v18  ;;  %v337_v35 = vsel %vm304_vm1, %v230_v28, %v321_v32 }
 0x123   :  { %v816_v37 = vpop.f32.mrf.mxu0  ;;  %951 = vmatmul.mubr.f32.vlgmr.msra.gmra.mxu1 %v337_v35 }
 0x124   :  { %v817_v38 = vadd.f32 %v816_v37, %v815_v33  ;;  %vm305_vm2 = vcmp.ge.f32.partialorder %v235_v34, 0.0  ;;  %v322_v39 = vmul.f32 %v1230_v22, %v235_v34  ;;  %975 = vmatpush3.msra.mxu1 %v584_v16 }
 0x125   :  { %v818_v41 = vpop.f32.mrf.mxu0  ;;  %976 = vmatprep.subr.mxu1 %v583_v36 }
 0x126   :  { %v240_v42 = vadd.f32 %v817_v38, %v1225_v18  ;;  %v338_v43 = vsel %vm305_vm2, %v235_v34, %v322_v39  ;;  %977 = vmatpush3.msra.mxu1 %v583_v36 }
 0x127   :  { %v819_v45 = vpop.f32.mrf.mxu0  ;;  %953 = vmatprep.mubr.f32.mxu1 %v338_v43  ;;  %978 = vmatprep.subr.mxu1 %v582_v40 }
 0x128   :  { %v820_v46 = vadd.f32 %v819_v45, %v818_v41  ;;  %vm306_vm3 = vcmp.ge.f32.partialorder %v240_v42, 0.0  ;;  %v323_v47 = vmul.f32 %v1230_v22, %v240_v42  ;;  %979 = vmatpush3.msra.mxu1 %v582_v40 }
 0x129   :  { %v821_v49 = vpop.f32.mrf.mxu0  ;;  %980 = vmatprep.subr.mxu1 %v581_v44 }
 0x12a   :  { %v245_v50 = vadd.f32 %v820_v46, %v1225_v18  ;;  %v339_v51 = vsel %vm306_vm3, %v240_v42, %v323_v47  ;;  %981 = vmatpush3.msra.mxu1 %v581_v44 }
 0x12b   :  { %v822_v53 = vpop.f32.mrf.mxu0  ;;  %954 = vmatmul.mubr.f32.gmra.mxu1 %v339_v51  ;;  %982 = vmatprep.subr.mxu1 %v580_v48 }
 0x12c   :  { %v823_v54 = vadd.f32 %v822_v53, %v821_v49  ;;  %vm307_vm4 = vcmp.ge.f32.partialorder %v245_v50, 0.0  ;;  %v324_v55 = vmul.f32 %v1230_v22, %v245_v50  ;;  %983 = vmatpush3.msra.mxu1 %v580_v48 }
 0x12d   :  { %v824_v57 = vpop.f32.mrf.mxu0  ;;  %984 = vmatprep.subr.mxu1 %v579_v52 }
 0x12e   :  { %v250_v58 = vadd.f32 %v823_v54, %v1225_v18  ;;  %v340_v59 = vsel %vm307_vm4, %v245_v50, %v324_v55  ;;  %985 = vmatpush3.msra.mxu1 %v579_v52 }
 0x12f   :  { %v825_v61 = vpop.f32.mrf.mxu0  ;;  %956 = vmatprep.mubr.f32.mxu1 %v340_v59  ;;  %986 = vmatprep.subr.mxu1 %v578_v56 }
 0x130   :  { %v826_v62 = vadd.f32 %v825_v61, %v824_v57  ;;  %vm308_vm5 = vcmp.ge.f32.partialorder %v250_v58, 0.0  ;;  %v325_v63 = vmul.f32 %v1230_v22, %v250_v58  ;;  %987 = vmatpush3.msra.mxu1 %v578_v56 }
 0x131   :  { %v827_v1 = vpop.f32.mrf.mxu0  ;;  %988 = vmatprep.subr.mxu1 %v577_v60 }
 0x132   :  { %v255_v2 = vadd.f32 %v826_v62, %v1225_v18  ;;  %v341_v3 = vsel %vm308_vm5, %v250_v58, %v325_v63  ;;  %989 = vmatpush3.msra.mxu1 %v577_v60 }
 0x133   :  { %v828_v5 = vpop.f32.mrf.mxu0  ;;  %957 = vmatmul.mubr.f32.gmra.mxu1 %v341_v3  ;;  %990 = vmatprep.subr.mxu1 %v576_v0  ;;  %v569_v3 = vld [vmem:[#allocation9] sm:$0xff] }
 0x134   :  { %v829_v6 = vadd.f32 %v828_v5, %v827_v1  ;;  %vm309_vm6 = vcmp.ge.f32.partialorder %v255_v2, 0.0  ;;  %v326_v7 = vmul.f32 %v1230_v22, %v255_v2  ;;  %991 = vmatpush3.msra.mxu1 %v576_v0  ;;  %v572_v0 = vld [vmem:[#allocation9 + $0x18] sm:$0xff]  ;;  %v571_v1 = vld [vmem:[#allocation9 + $0x10] sm:$0xff] }
 0x135   :  { %v830_v9 = vpop.f32.mrf.mxu0  ;;  %992 = vmatprep.subr.mxu1 %v575_v4 }
 0x136   :  { %v260_v10 = vadd.f32 %v829_v6, %v1225_v18  ;;  %v342_v11 = vsel %vm309_vm6, %v255_v2, %v326_v7  ;;  %993 = vmatpush3.msra.mxu1 %v575_v4  ;;  %v570_v2 = vld [vmem:[#allocation9 + $0x8] sm:$0xff] }
 0x137   :  { %v831_v13 = vpop.f32.mrf.mxu0  ;;  %959 = vmatprep.mubr.f32.mxu1 %v342_v11  ;;  %994 = vmatprep.subr.mxu1 %v574_v8 }
 0x138   :  { %v832_v14 = vadd.f32 %v831_v13, %v830_v9  ;;  %vm310_vm7 = vcmp.ge.f32.partialorder %v260_v10, 0.0  ;;  %v327_v15 = vmul.f32 %v1230_v22, %v260_v10  ;;  %995 = vmatpush3.msra.mxu1 %v574_v8 }
 0x139   :  { %v833_v16 = vpop.f32.mrf.mxu0  ;;  %996 = vmatprep.subr.mxu1 %v573_v12 }
 0x13a   :  { %v265_v17 = vadd.f32 %v832_v14, %v1225_v18  ;;  %v343_v19 = vsel %vm310_vm7, %v260_v10, %v327_v15  ;;  %997 = vmatpush3.msra.mxu1 %v573_v12 }
 0x13b   :  { %v834_v20 = vpop.f32.mrf.mxu0  ;;  %960 = vmatmul.mubr.f32.gmra.mxu1 %v343_v19  ;;  %998 = vmatprep.subr.mxu1 %v572_v0 }
 0x13c   :  { %v835_v21 = vadd.f32 %v834_v20, %v833_v16  ;;  %vm311_vm8 = vcmp.ge.f32.partialorder %v265_v17, 0.0  ;;  %v328_v23 = vmul.f32 %v1230_v22, %v265_v17  ;;  %999 = vmatpush3.msra.mxu1 %v572_v0 }
 0x13d   :  { %v836_v24 = vpop.f32.mrf.mxu0  ;;  %1000 = vmatprep.subr.mxu1 %v571_v1 }
 0x13e   :  { %v270_v25 = vadd.f32 %v835_v21, %v1225_v18  ;;  %v344_v26 = vsel %vm311_vm8, %v265_v17, %v328_v23  ;;  %1001 = vmatpush3.msra.mxu1 %v571_v1 }
 0x13f   :  { %v837_v27 = vpop.f32.mrf.mxu0  ;;  %962 = vmatprep.mubr.f32.mxu1 %v344_v26  ;;  %1002 = vmatprep.subr.mxu1 %v570_v2 }
 0x140   :  { %v838_v28 = vadd.f32 %v837_v27, %v836_v24  ;;  %vm312_vm9 = vcmp.ge.f32.partialorder %v270_v25, 0.0  ;;  %v329_v29 = vmul.f32 %v1230_v22, %v270_v25  ;;  %1003 = vmatpush3.msra.mxu1 %v570_v2 }
 0x141   :  { %v839_v30 = vpop.f32.mrf.mxu0  ;;  %1004 = vmatprep.subr.mxu1 %v569_v3 }
 0x142   :  { %v275_v31 = vadd.f32 %v838_v28, %v1225_v18  ;;  %v345_v32 = vsel %vm312_vm9, %v270_v25, %v329_v29  ;;  %1005 = vmatpush3.msra.mxu1 %v569_v3 }
 0x143   :  { %v840_v33 = vpop.f32.mrf.mxu0  ;;  %963 = vmatmul.mubr.f32.gmra.mxu1 %v345_v32 }
 0x144   :  { %v841_v34 = vadd.f32 %v840_v33, %v839_v30  ;;  %vm313_vm10 = vcmp.ge.f32.partialorder %v275_v31, 0.0  ;;  %v330_v35 = vmul.f32 %v1230_v22, %v275_v31 }
 0x145   :  { %v842_v36 = vpop.f32.mrf.mxu0 }
 0x146   :  { %v280_v37 = vadd.f32 %v841_v34, %v1225_v18  ;;  %v346_v38 = vsel %vm313_vm10, %v275_v31, %v330_v35 }
 0x147   :  { %v843_v39 = vpop.f32.mrf.mxu0  ;;  %965 = vmatprep.mubr.f32.mxu1 %v346_v38 }
 0x148   :  { %v844_v40 = vadd.f32 %v843_v39, %v842_v36  ;;  %vm314_vm11 = vcmp.ge.f32.partialorder %v280_v37, 0.0  ;;  %v331_v41 = vmul.f32 %v1230_v22, %v280_v37 }
 0x149   :  { %v845_v42 = vpop.f32.mrf.mxu0 }
 0x14a   :  { %v285_v43 = vadd.f32 %v844_v40, %v1225_v18  ;;  %v347_v44 = vsel %vm314_vm11, %v280_v37, %v331_v41 }
 0x14b   :  { %v846_v45 = vpop.f32.mrf.mxu0  ;;  %966 = vmatmul.mubr.f32.gmra.mxu1 %v347_v44 }
 0x14c   :  { %v847_v46 = vadd.f32 %v846_v45, %v845_v42  ;;  %vm315_vm12 = vcmp.ge.f32.partialorder %v285_v43, 0.0  ;;  %v332_v47 = vmul.f32 %v1230_v22, %v285_v43 }
 0x14d   :  { %v848_v48 = vpop.f32.mrf.mxu0 }
 0x14e   :  { %v290_v49 = vadd.f32 %v847_v46, %v1225_v18  ;;  %v348_v50 = vsel %vm315_vm12, %v285_v43, %v332_v47 }
 0x14f   :  { %v849_v51 = vpop.f32.mrf.mxu0  ;;  %968 = vmatprep.mubr.f32.mxu1 %v348_v50 }
 0x150   :  { %v850_v52 = vadd.f32 %v849_v51, %v848_v48  ;;  %vm316_vm13 = vcmp.ge.f32.partialorder %v290_v49, 0.0  ;;  %v333_v53 = vmul.f32 %v1230_v22, %v290_v49 }
 0x151   :  { %v851_v54 = vpop.f32.mrf.mxu0 }
 0x152   :  { %v295_v55 = vadd.f32 %v850_v52, %v1225_v18  ;;  %v349_v56 = vsel %vm316_vm13, %v290_v49, %v333_v53 }
 0x153   :  { %v852_v57 = vpop.f32.mrf.mxu0  ;;  %969 = vmatmul.mubr.f32.gmra.mxu1 %v349_v56 }
 0x154   :  { %v853_v58 = vadd.f32 %v852_v57, %v851_v54  ;;  %vm317_vm14 = vcmp.ge.f32.partialorder %v295_v55, 0.0  ;;  %v334_v59 = vmul.f32 %v1230_v22, %v295_v55 }
 0x156   :  { %v300_v60 = vadd.f32 %v853_v58, %v1225_v18  ;;  %v350_v61 = vsel %vm317_vm14, %v295_v55, %v334_v59  ;;  %v1267_v18 = vld [vmem:[%s1314_s4] ss:$0 sm:$0xff] }
 0x157   :  { %971 = vmatprep.mubr.f32.mxu1 %v350_v61 }
 0x158   :  { %vm318_vm15 = vcmp.ge.f32.partialorder %v300_v60, 0.0  ;;  %v335_v62 = vmul.f32 %v1230_v22, %v300_v60 }
 0x15a   :  { %v351_v63 = vsel %vm318_vm15, %v300_v60, %v335_v62 }
 0x15b   :  { %972 = vmatmul.mubr.f32.gmra.mxu1 %v351_v63 }
 0x1e3   :  { %v952_v4 = vpop.f32.mrf.mxu1 }
 0x1e4   :  { %v447_v5 = vadd.f32 %v952_v4, %v1267_v18 }
 0x1e5   :  { %v441_v6 = vpop.f32.mrf.mxu1 }
 0x1e6   :  { %v442_v7 = vadd.f32 %v1267_v18, %v441_v6  ;;  %v537_v8 = vmul.f32 %v447_v5, %v1230_v22  ;;  %vm521_vm0 = vcmp.ge.f32.partialorder %v447_v5, 0.0  ;;  %v773_v6 = vld [vmem:[%s1316_s6] ss:$0 sm:$0xff]  ;;  %s1155_s6 = smov [#allocation11]  }
 0x1e7   :  { %s757_s10 = sshll.u32 %s1155_s6, 4  ;;  %s758_s10 = int_to_ptr.vmem [resolvable:$true] %s757_s10 }
 0x1e8   :  { %v536_v9 = vmul.f32 %v442_v7, %v1230_v22  ;;  %vm520_vm1 = vcmp.ge.f32.partialorder %v442_v7, 0.0  ;;  %v553_v11 = vsel %vm521_vm0, %v447_v5, %v537_v8  ;;  %s1119_s11 = scalar_lea.vmem %s758_s10, 2048  ;;  %p1124_p7 = scmp.lt.s32.totalorder %s758_s10, %s758_s10 }
 0x1e9   :  { %p1120_p6 = scmp.ne.s32.totalorder %s758_s10, %s1119_s11  ;;  %p1125_p8 = scmp.lt.s32.totalorder %s1119_s11, %s1119_s11 }
 0x1ea   :  { %v552_v10 = vsel %vm520_vm1, %v442_v7, %v536_v9 }
 0x1eb   :  { %v955_v12 = vpop.f32.mrf.mxu1  ;;  %1006 = vmatprep.mubr.f32.mxu1 %v552_v10  ;;  %p1126_p9 = por %p1125_p8, %p1124_p7 }
 0x1ec   :  { %v457_v13 = vadd.f32 %v955_v12, %v1267_v18  ;;  %1007 = vmatmul.mubr.f32.vlgmr.msra.gmra.mxu1 %v553_v11 }
 0x1ed   :  { %v451_v14 = vpop.f32.mrf.mxu1  ;;  %p1127_p10 = pnand %p1126_p9, %p1120_p6 }
 0x1ee   :  { %v452_v15 = vadd.f32 %v1267_v18, %v451_v14  ;;  %v539_v16 = vmul.f32 %v457_v13, %v1230_v22  ;;  %vm523_vm3 = vcmp.ge.f32.partialorder %v457_v13, 0.0 }
 0x1f0   :  { %v538_v17 = vmul.f32 %v452_v15, %v1230_v22  ;;  %vm522_vm2 = vcmp.ge.f32.partialorder %v452_v15, 0.0  ;;  %v555_v21 = vsel %vm523_vm3, %v457_v13, %v539_v16 }
 0x1f2   :  { %v554_v19 = vsel %vm522_vm2, %v452_v15, %v538_v17 }
 0x1f3   :  { %v958_v20 = vpop.f32.mrf.mxu1  ;;  %1009 = vmatprep.mubr.f32.mxu1 %v554_v19 }
 0x1f4   :  { %v467_v23 = vadd.f32 %v958_v20, %v1267_v18  ;;  %1010 = vmatmul.mubr.f32.gmra.mxu1 %v555_v21 }
 0x1f5   :  { %v461_v24 = vpop.f32.mrf.mxu1 }
 0x1f6   :  { %v462_v25 = vadd.f32 %v1267_v18, %v461_v24  ;;  %v541_v26 = vmul.f32 %v467_v23, %v1230_v22  ;;  %vm525_vm5 = vcmp.ge.f32.partialorder %v467_v23, 0.0 }
 0x1f8   :  { %v540_v27 = vmul.f32 %v462_v25, %v1230_v22  ;;  %vm524_vm4 = vcmp.ge.f32.partialorder %v462_v25, 0.0  ;;  %v557_v30 = vsel %vm525_vm5, %v467_v23, %v541_v26 }
 0x1fa   :  { %v556_v28 = vsel %vm524_vm4, %v462_v25, %v540_v27 }
 0x1fb   :  { %v961_v29 = vpop.f32.mrf.mxu1  ;;  %1012 = vmatprep.mubr.f32.mxu1 %v556_v28 }
 0x1fc   :  { %v477_v31 = vadd.f32 %v961_v29, %v1267_v18  ;;  %1013 = vmatmul.mubr.f32.gmra.mxu1 %v557_v30 }
 0x1fd   :  { %v471_v32 = vpop.f32.mrf.mxu1 }
 0x1fe   :  { %v472_v33 = vadd.f32 %v1267_v18, %v471_v32  ;;  %v543_v34 = vmul.f32 %v477_v31, %v1230_v22  ;;  %vm527_vm7 = vcmp.ge.f32.partialorder %v477_v31, 0.0 }
 0x200   :  { %v542_v35 = vmul.f32 %v472_v33, %v1230_v22  ;;  %vm526_vm6 = vcmp.ge.f32.partialorder %v472_v33, 0.0  ;;  %v559_v38 = vsel %vm527_vm7, %v477_v31, %v543_v34 }
 0x202   :  { %v558_v36 = vsel %vm526_vm6, %v472_v33, %v542_v35 }
 0x203   :  { %v964_v37 = vpop.f32.mrf.mxu1  ;;  %1015 = vmatprep.mubr.f32.mxu1 %v558_v36 }
 0x204   :  { %v487_v39 = vadd.f32 %v964_v37, %v1267_v18  ;;  %1016 = vmatmul.mubr.f32.gmra.mxu1 %v559_v38 }
 0x205   :  { %v481_v40 = vpop.f32.mrf.mxu1 }
 0x206   :  { %v482_v41 = vadd.f32 %v1267_v18, %v481_v40  ;;  %v545_v42 = vmul.f32 %v487_v39, %v1230_v22  ;;  %vm529_vm9 = vcmp.ge.f32.partialorder %v487_v39, 0.0 }
 0x208   :  { %v544_v43 = vmul.f32 %v482_v41, %v1230_v22  ;;  %vm528_vm8 = vcmp.ge.f32.partialorder %v482_v41, 0.0  ;;  %v561_v46 = vsel %vm529_vm9, %v487_v39, %v545_v42 }
 0x20a   :  { %v560_v44 = vsel %vm528_vm8, %v482_v41, %v544_v43 }
 0x20b   :  { %v967_v45 = vpop.f32.mrf.mxu1  ;;  %1018 = vmatprep.mubr.f32.mxu1 %v560_v44 }
 0x20c   :  { %v497_v47 = vadd.f32 %v967_v45, %v1267_v18  ;;  %1019 = vmatmul.mubr.f32.gmra.mxu1 %v561_v46 }
 0x20d   :  { %v491_v48 = vpop.f32.mrf.mxu1 }
 0x20e   :  { %v492_v49 = vadd.f32 %v1267_v18, %v491_v48  ;;  %v547_v50 = vmul.f32 %v497_v47, %v1230_v22  ;;  %vm531_vm11 = vcmp.ge.f32.partialorder %v497_v47, 0.0 }
 0x210   :  { %v546_v51 = vmul.f32 %v492_v49, %v1230_v22  ;;  %vm530_vm10 = vcmp.ge.f32.partialorder %v492_v49, 0.0  ;;  %v563_v54 = vsel %vm531_vm11, %v497_v47, %v547_v50 }
 0x212   :  { %v562_v52 = vsel %vm530_vm10, %v492_v49, %v546_v51 }
 0x213   :  { %v970_v53 = vpop.f32.mrf.mxu1  ;;  %1021 = vmatprep.mubr.f32.mxu1 %v562_v52 }
 0x214   :  { %v507_v55 = vadd.f32 %v970_v53, %v1267_v18  ;;  %1022 = vmatmul.mubr.f32.gmra.mxu1 %v563_v54 }
 0x215   :  { %v501_v56 = vpop.f32.mrf.mxu1 }
 0x216   :  { %v502_v57 = vadd.f32 %v1267_v18, %v501_v56  ;;  %v549_v58 = vmul.f32 %v507_v55, %v1230_v22  ;;  %vm533_vm13 = vcmp.ge.f32.partialorder %v507_v55, 0.0 }
 0x218   :  { %v548_v59 = vmul.f32 %v502_v57, %v1230_v22  ;;  %vm532_vm12 = vcmp.ge.f32.partialorder %v502_v57, 0.0  ;;  %v565_v62 = vsel %vm533_vm13, %v507_v55, %v549_v58 }
 0x21a   :  { %v564_v60 = vsel %vm532_vm12, %v502_v57, %v548_v59 }
 0x21b   :  { %v973_v61 = vpop.f32.mrf.mxu1  ;;  %1024 = vmatprep.mubr.f32.mxu1 %v564_v60 }
 0x21c   :  { %v517_v63 = vadd.f32 %v973_v61, %v1267_v18  ;;  %1025 = vmatmul.mubr.f32.gmra.mxu1 %v565_v62 }
 0x21d   :  { %v511_v0 = vpop.f32.mrf.mxu1 }
 0x21e   :  { %v512_v1 = vadd.f32 %v1267_v18, %v511_v0  ;;  %v551_v2 = vmul.f32 %v517_v63, %v1230_v22  ;;  %vm535_vm15 = vcmp.ge.f32.partialorder %v517_v63, 0.0 }
 0x220   :  { %v550_v3 = vmul.f32 %v512_v1, %v1230_v22  ;;  %vm534_vm14 = vcmp.ge.f32.partialorder %v512_v1, 0.0  ;;  %v567_v5 = vsel %vm535_vm15, %v517_v63, %v551_v2 }
 0x222   :  { %v566_v4 = vsel %vm534_vm14, %v512_v1, %v550_v3 }
 0x223   :  { %1027 = vmatprep.mubr.f32.mxu1 %v566_v4 }
 0x224   :  { %1028 = vmatmul.mubr.f32.gmra.mxu1 %v567_v5 }
 0x2ac   :  { %v1008_v7 = vpop.f32.mrf.mxu1 }
 0x2ad   :  { %v663_v8 = vadd.f32 %v1008_v7, %v773_v6 }
 0x2ae   :  { %v657_v9 = vpop.f32.mrf.mxu1 }
 0x2af   :  { %737 = vst [vmem:[#allocation11 + $0x8] sm:$0xff] %v663_v8  ;;  %v658_v10 = vadd.f32 %v773_v6, %v657_v9 }
 0x2b1   :  { %736 = vst [vmem:[#allocation11] sm:$0xff] %v658_v10 }
 0x2b4   :  { %v1011_v18 = vpop.f32.mrf.mxu1 }
 0x2b5   :  { %v673_v11 = vadd.f32 %v1011_v18, %v773_v6 }
 0x2b6   :  { %v667_v12 = vpop.f32.mrf.mxu1 }
 0x2b7   :  { %739 = vst [vmem:[#allocation11 + $0x18] sm:$0xff] %v673_v11  ;;  %v668_v22 = vadd.f32 %v773_v6, %v667_v12 }
 0x2b9   :  { %738 = vst [vmem:[#allocation11 + $0x10] sm:$0xff] %v668_v22 }
 0x2bc   :  { %v1014_v13 = vpop.f32.mrf.mxu1 }
 0x2bd   :  { %v683_v14 = vadd.f32 %v1014_v13, %v773_v6 }
 0x2be   :  { %v677_v15 = vpop.f32.mrf.mxu1 }
 0x2bf   :  { %741 = vst [vmem:[#allocation11 + $0x28] sm:$0xff] %v683_v14  ;;  %v678_v16 = vadd.f32 %v773_v6, %v677_v15 }
 0x2c1   :  { %740 = vst [vmem:[#allocation11 + $0x20] sm:$0xff] %v678_v16 }
 0x2c4   :  { %v1017_v17 = vpop.f32.mrf.mxu1 }
 0x2c5   :  { %v693_v19 = vadd.f32 %v1017_v17, %v773_v6 }
 0x2c6   :  { %v687_v20 = vpop.f32.mrf.mxu1 }
 0x2c7   :  { %743 = vst [vmem:[#allocation11 + $0x38] sm:$0xff] %v693_v19  ;;  %v688_v21 = vadd.f32 %v773_v6, %v687_v20 }
 0x2c9   :  { %742 = vst [vmem:[#allocation11 + $0x30] sm:$0xff] %v688_v21 }
 0x2cc   :  { %v1020_v23 = vpop.f32.mrf.mxu1 }
 0x2cd   :  { %v703_v24 = vadd.f32 %v1020_v23, %v773_v6 }
 0x2ce   :  { %v697_v25 = vpop.f32.mrf.mxu1 }
 0x2cf   :  { %745 = vst [vmem:[#allocation11 + $0x48] sm:$0xff] %v703_v24  ;;  %v698_v26 = vadd.f32 %v773_v6, %v697_v25 }
 0x2d1   :  { %744 = vst [vmem:[#allocation11 + $0x40] sm:$0xff] %v698_v26 }
 0x2d4   :  { %v1023_v27 = vpop.f32.mrf.mxu1 }
 0x2d5   :  { %v713_v28 = vadd.f32 %v1023_v27, %v773_v6 }
 0x2d6   :  { %v707_v29 = vpop.f32.mrf.mxu1 }
 0x2d7   :  { %747 = vst [vmem:[#allocation11 + $0x58] sm:$0xff] %v713_v28  ;;  %v708_v30 = vadd.f32 %v773_v6, %v707_v29 }
 0x2d9   :  { %746 = vst [vmem:[#allocation11 + $0x50] sm:$0xff] %v708_v30 }
 0x2dc   :  { %v1026_v31 = vpop.f32.mrf.mxu1 }
 0x2dd   :  { %v723_v32 = vadd.f32 %v1026_v31, %v773_v6 }
 0x2de   :  { %v717_v33 = vpop.f32.mrf.mxu1 }
 0x2df   :  { %749 = vst [vmem:[#allocation11 + $0x68] sm:$0xff] %v723_v32  ;;  %v718_v34 = vadd.f32 %v773_v6, %v717_v33 }
 0x2e1   :  { %748 = vst [vmem:[#allocation11 + $0x60] sm:$0xff] %v718_v34 }
 0x2e4   :  { %v1029_v35 = vpop.f32.mrf.mxu1 }
 0x2e5   :  { %v733_v36 = vadd.f32 %v1029_v35, %v773_v6 }
 0x2e6   :  { %v727_v37 = vpop.f32.mrf.mxu1 }
 0x2e7   :  { %751 = vst [vmem:[#allocation11 + $0x78] sm:$0xff] %v733_v36  ;;  %v728_v38 = vadd.f32 %v773_v6, %v727_v37 }
 0x2e9   :  { %750 = vst [vmem:[#allocation11 + $0x70] sm:$0xff] %v728_v38 }
 0x2ea   :  { %1130 = shalt.err (!%p1127_p10)
}
 0x2eb   :  { %763 = dma.vmem_to_hbm [thread:$0]  %s758_s10, 2048, %s1318_s8, [#allocation5], %s1148_s30, %s1148_s30, %s1149_s9  }
 0x2ec   :  { %1145 = dma.done.wait [#allocation5], 2048  }
 0x2ed   :  { %1146 = vsyncadd [#allocation5], 4294965248 }
 0x2ee   :  { %767 = vsyncpa [#allocation4], 1 }
 0x2ef   :  { %768 = vsyncpa [#allocation7], 1 }
 0x2f0   :  { %769 = vsyncpa [#allocation10], 1 }
 0x2f1   :  { %770 = vsyncpa [#allocation5], 1 }

</bundles_post_ra>
